<compile_context>
chip_gen: v6e
topology: v6e:2x2x1
jax: 0.10.0
libtpu: 0.0.40
codegen_flags: <defaults>
</compile_context>

<pallas_src>
import jax
import jax.numpy as jnp
from jax.experimental import pallas as pl
from jax.experimental.pallas import tpu as pltpu  # noqa: F401  (TPU backend assumed)


# ----------------------------- fused GRU kernel -----------------------------

def encoder_gru_kernel(gi_ref, w_hh_ref, b_hn_ref, w_fc_ref, b_fc_ref,
                       out_ref, hid_ref):
    """Fused bidirectional GRU recurrence + final fc/tanh (single invocation).

    gi_ref   : (2, T, B, 3H)  precomputed input-path activations per direction
                              (forward time order), gate columns [r|z|n],
                              b_ih (+ b_hh for r,z) already folded in.
    w_hh_ref : (2, H, 3H)     per-direction hidden weights, pre-transposed, [r|z|n].
    b_hn_ref : (2, 1, H)      hidden bias of the n gate (applied inside r*(...)).
    w_fc_ref : (2, H, H)      per-direction halves of fc.weight, pre-transposed.
    b_fc_ref : (1, H)         fc bias.
    out_ref  : (T, B, 2H)     GRU outputs; [..., :H] forward, [..., H:] backward.
    hid_ref  : (B, H)         tanh(fc(cat(h_fwd_final, h_bwd_final))).
    """
    T, B, _ = out_ref.shape
    H = hid_ref.shape[-1]

    w_hh_f = w_hh_ref[0]                 # (H, 3H)
    w_hh_b = w_hh_ref[1]
    b_hn_f = b_hn_ref[0]                 # (1, H)
    b_hn_b = b_hn_ref[1]

    h_f = jnp.zeros((B, H), jnp.float32)
    h_b = jnp.zeros((B, H), jnp.float32)

    def gru_cell(h, gi, w_hh, b_hn):
        # One combined (B,H)x(H,3H) dot per step per direction (gates fused).
        gh = jnp.dot(h, w_hh, preferred_element_type=jnp.float32)   # (B, 3H)
        r = jax.nn.sigmoid(gi[:, :H] + gh[:, :H])
        z = jax.nn.sigmoid(gi[:, H:2 * H] + gh[:, H:2 * H])
        n = jnp.tanh(gi[:, 2 * H:] + r * (gh[:, 2 * H:] + b_hn))
        return (1.0 - z) * n + z * h

    # T is small and static -> fully unrolled.  The two directions are
    # independent, so their per-step MXU latencies overlap each other's
    # VPU/EUP gate math on a single TensorCore.
    for t in range(T):
        h_f = gru_cell(h_f, gi_ref[0, t], w_hh_f, b_hn_f)
        h_b = gru_cell(h_b, gi_ref[1, T - 1 - t], w_hh_b, b_hn_b)
        out_ref[t, :, 0:H] = h_f            # forward half of time slab t
        out_ref[T - 1 - t, :, H:2 * H] = h_b  # backward half, time-aligned

    # Fused fc(cat(h_f, h_b)) + bias + tanh.
    hid_ref[...] = jnp.tanh(
        jnp.dot(h_f, w_fc_ref[0], preferred_element_type=jnp.float32)
        + jnp.dot(h_b, w_fc_ref[1], preferred_element_type=jnp.float32)
        + b_fc_ref[...])


# ----------------------------- parameter prep -------------------------------

def prep_encoder_params(params):
    """One-time prep, hoisted out of the per-call path.

    Folds embedding-lookup + input matmul + input biases into a gather table:
        emb[i] @ W_ih^T + b  ==  (embedding @ W_ih^T + b)[i]
    (valid in eval mode, where dropout is identity).
    """
    hi = jax.lax.Precision.HIGHEST
    emb = params["embedding"]            # (V, E)
    w_ih = params["w_ih"]                # (2, 3H, E)  rows [W_ir; W_iz; W_in]
    w_hh = params["w_hh"]                # (2, 3H, H)
    b_ih = params["b_ih"]                # (2, 1, 3H)
    b_hh = params["b_hh"]                # (2, 1, 3H)
    w_fc = params["w_fc"]                # (H, 2H)     nn.Linear(2H, H).weight
    H = w_hh.shape[2]

    w_ih_t = jnp.transpose(w_ih, (0, 2, 1))     # (2, E, 3H), cols [r|z|n]
    w_hh_t = jnp.transpose(w_hh, (0, 2, 1))     # (2, H, 3H)

    # r/z gates: fold b_ih + b_hh into the input path.
    # n gate: only b_in here; b_hn stays inside the r*(...) recurrence term.
    b_i = b_ih + jnp.concatenate(
        [b_hh[..., :2 * H], jnp.zeros_like(b_hh[..., 2 * H:])], axis=-1)
    b_hn = b_hh[..., 2 * H:]                     # (2, 1, H)

    gi_table = jnp.einsum("ve,deh->dvh", emb, w_ih_t, precision=hi) + b_i  # (2,V,3H)

    # cat(h_f, h_b) @ W_fc^T == h_f @ W_fc[:, :H]^T + h_b @ W_fc[:, H:]^T
    w_fc_g = jnp.stack([w_fc[:, :H].T, w_fc[:, H:].T], axis=0)             # (2,H,H)

    return {
        "gi_table": gi_table,
        "w_hh": w_hh_t,
        "b_hn": b_hn,
        "w_fc": w_fc_g,
        "b_fc": params["b_fc"],
    }


# ----------------------------- Encoder forward -------------------------------

@jax.jit
def encoder_forward(src, prepped):
    """Eval-mode Encoder.forward: returns (outputs [T,B,2H], hidden [B,H])."""
    # TODO(synk): nn.Dropout is identity in eval mode; training-mode dropout
    # (elementwise mask on the embedded inputs) is not implemented here.
    T, B = src.shape
    H = prepped["w_fc"].shape[-1]

    # Fused embedding lookup + input-path matmul + input bias: one gather.
    gi = jnp.take(prepped["gi_table"], src, axis=1)          # (2, T, B, 3H)

    outputs, hidden = pl.pallas_call(
        encoder_gru_kernel,
        out_shape=(
            jax.ShapeDtypeStruct((T, B, 2 * H), jnp.float32),
            jax.ShapeDtypeStruct((B, H), jnp.float32),
        ),
    )(gi, prepped["w_hh"], prepped["b_hn"], prepped["w_fc"], prepped["b_fc"])
    return outputs, hidden


# ----------------------------- pure-JAX reference ----------------------------

def _gru_dir_ref(x, w_ih, w_hh, b_ih, b_hh):
    hi = jax.lax.Precision.HIGHEST
    T, B, _ = x.shape
    H = w_hh.shape[1]
    h = jnp.zeros((B, H), jnp.float32)
    outs = []
    for t in range(T):
        gi = jnp.dot(x[t], w_ih.T, precision=hi) + b_ih
        gh = jnp.dot(h, w_hh.T, precision=hi) + b_hh
        r = jax.nn.sigmoid(gi[:, :H] + gh[:, :H])
        z = jax.nn.sigmoid(gi[:, H:2 * H] + gh[:, H:2 * H])
        n = jnp.tanh(gi[:, 2 * H:] + r * gh[:, 2 * H:])
        h = (1.0 - z) * n + z * h
        outs.append(h)
    return jnp.stack(outs), h


def encoder_reference(src, params):
    hi = jax.lax.Precision.HIGHEST
    emb = jnp.take(params["embedding"], src, axis=0)
    out_f, h_f = _gru_dir_ref(emb, params["w_ih"][0], params["w_hh"][0],
                              params["b_ih"][0], params["b_hh"][0])
    out_b_rev, h_b = _gru_dir_ref(emb[::-1], params["w_ih"][1], params["w_hh"][1],
                                  params["b_ih"][1], params["b_hh"][1])
    outputs = jnp.concatenate([out_f, out_b_rev[::-1]], axis=-1)
    h_cat = jnp.concatenate([h_f, h_b], axis=-1)
    hidden = jnp.tanh(jnp.dot(h_cat, params["w_fc"].T, precision=hi)
                      + params["b_fc"])
    return outputs, hidden


# ----------------------------- main ------------------------------------------

if __name__ == "__main__":
    INPUT_DIM, EMB_DIM, HID_DIM = 11, 32, 32   # dropout p=0.1 (identity in eval)
    T, B = 8, 2

    key = jax.random.PRNGKey(0)
    ks = jax.random.split(key, 8)
    scale = 1.0 / float(jnp.sqrt(HID_DIM))
    params = {
        "embedding": 0.1 * jax.random.normal(ks[0], (INPUT_DIM, EMB_DIM), jnp.float32),
        "w_ih": jax.random.uniform(ks[1], (2, 3 * HID_DIM, EMB_DIM), jnp.float32, -scale, scale),
        "w_hh": jax.random.uniform(ks[2], (2, 3 * HID_DIM, HID_DIM), jnp.float32, -scale, scale),
        "b_ih": jax.random.uniform(ks[3], (2, 1, 3 * HID_DIM), jnp.float32, -scale, scale),
        "b_hh": jax.random.uniform(ks[4], (2, 1, 3 * HID_DIM), jnp.float32, -scale, scale),
        "w_fc": jax.random.uniform(ks[5], (HID_DIM, 2 * HID_DIM), jnp.float32, -scale, scale),
        "b_fc": jax.random.uniform(ks[6], (1, HID_DIM), jnp.float32, -scale, scale),
    }
    src = jax.random.randint(ks[7], (T, B), 0, INPUT_DIM, dtype=jnp.int32)

    prepped = prep_encoder_params(params)          # one-time, outside jit path
    jax.block_until_ready(prepped)

    outputs, hidden = encoder_forward(src, prepped)
    jax.block_until_ready((outputs, hidden))

    ref_out, ref_hid = encoder_reference(src, params)
    assert outputs.shape == (T, B, 2 * HID_DIM)
    assert hidden.shape == (B, HID_DIM)
    assert jnp.allclose(outputs, ref_out, atol=1e-4, rtol=1e-4), (
        float(jnp.max(jnp.abs(outputs - ref_out))))
    assert jnp.allclose(hidden, ref_hid, atol=1e-4, rtol=1e-4), (
        float(jnp.max(jnp.abs(hidden - ref_hid))))
    print("KERNEL_OK")
</pallas_src>

<mosaic_0001>
module attributes {stable_mosaic.version = 11 : i64} {
  func.func @encoder_gru_kernel(%arg0: memref<2x8x2x96xf32, #tpu.memory_space<vmem>>, %arg1: memref<2x32x96xf32, #tpu.memory_space<vmem>>, %arg2: memref<2x1x32xf32, #tpu.memory_space<vmem>>, %arg3: memref<2x32x32xf32, #tpu.memory_space<vmem>>, %arg4: memref<1x32xf32, #tpu.memory_space<vmem>>, %arg5: memref<8x2x64xf32, #tpu.memory_space<vmem>>, %arg6: memref<2x32xf32, #tpu.memory_space<vmem>>) attributes {dimension_semantics = [], scalar_prefetch = 0 : i64, scratch_operands = 0 : i64, tpu.core_type = #tpu.core_type<tc>} {
    %c0 = arith.constant 0 : index
    %c0_0 = arith.constant 0 : index
    %c0_1 = arith.constant 0 : index
    %0 = vector.load %arg1[%c0, %c0_0, %c0_1] : memref<2x32x96xf32, #tpu.memory_space<vmem>>, vector<1x32x96xf32>
    %1 = vector.shape_cast %0 : vector<1x32x96xf32> to vector<32x96xf32>
    %c1 = arith.constant 1 : index
    %c0_2 = arith.constant 0 : index
    %c0_3 = arith.constant 0 : index
    %2 = vector.load %arg1[%c1, %c0_2, %c0_3] : memref<2x32x96xf32, #tpu.memory_space<vmem>>, vector<1x32x96xf32>
    %3 = vector.shape_cast %2 : vector<1x32x96xf32> to vector<32x96xf32>
    %c0_4 = arith.constant 0 : index
    %c0_5 = arith.constant 0 : index
    %c0_6 = arith.constant 0 : index
    %4 = vector.load %arg2[%c0_4, %c0_5, %c0_6] : memref<2x1x32xf32, #tpu.memory_space<vmem>>, vector<1x1x32xf32>
    %5 = vector.shape_cast %4 : vector<1x1x32xf32> to vector<1x32xf32>
    %c1_7 = arith.constant 1 : index
    %c0_8 = arith.constant 0 : index
    %c0_9 = arith.constant 0 : index
    %6 = vector.load %arg2[%c1_7, %c0_8, %c0_9] : memref<2x1x32xf32, #tpu.memory_space<vmem>>, vector<1x1x32xf32>
    %7 = vector.shape_cast %6 : vector<1x1x32xf32> to vector<1x32xf32>
    %cst = arith.constant 0.000000e+00 : f32
    %8 = vector.broadcast %cst : f32 to vector<2x32xf32>
    %cst_10 = arith.constant 0.000000e+00 : f32
    %9 = vector.broadcast %cst_10 : f32 to vector<2x32xf32>
    %c0_11 = arith.constant 0 : index
    %c0_12 = arith.constant 0 : index
    %c0_13 = arith.constant 0 : index
    %c0_14 = arith.constant 0 : index
    %10 = vector.load %arg0[%c0_11, %c0_12, %c0_13, %c0_14] : memref<2x8x2x96xf32, #tpu.memory_space<vmem>>, vector<1x1x2x96xf32>
    %11 = vector.shape_cast %10 : vector<1x1x2x96xf32> to vector<2x96xf32>
    %cst_15 = arith.constant dense<0.000000e+00> : vector<2x96xf32>
    %12 = tpu.matmul %8, %1, %cst_15 {dimension_numbers = #tpu.dot_dimension_numbers<[1], [0], [0], [1], [0, 0, 1, 1], [], []>} : vector<2x32xf32>, vector<32x96xf32>, vector<2x96xf32> -> vector<2x96xf32>
    %13 = vector.extract_strided_slice %11 {offsets = [0, 0], sizes = [2, 32], strides = [1, 1]} : vector<2x96xf32> to vector<2x32xf32>
    %14 = vector.extract_strided_slice %12 {offsets = [0, 0], sizes = [2, 32], strides = [1, 1]} : vector<2x96xf32> to vector<2x32xf32>
    %15 = arith.addf %13, %14 : vector<2x32xf32>
    %16 = arith.negf %15 : vector<2x32xf32>
    %17 = math.exp %16 : vector<2x32xf32>
    %cst_16 = arith.constant 1.000000e+00 : f32
    %18 = vector.broadcast %cst_16 : f32 to vector<2x32xf32>
    %19 = arith.addf %18, %17 : vector<2x32xf32>
    %20 = arith.divf %18, %19 : vector<2x32xf32>
    %21 = vector.extract_strided_slice %11 {offsets = [0, 32], sizes = [2, 32], strides = [1, 1]} : vector<2x96xf32> to vector<2x32xf32>
    %22 = vector.extract_strided_slice %12 {offsets = [0, 32], sizes = [2, 32], strides = [1, 1]} : vector<2x96xf32> to vector<2x32xf32>
    %23 = arith.addf %21, %22 : vector<2x32xf32>
    %24 = arith.negf %23 : vector<2x32xf32>
    %25 = math.exp %24 : vector<2x32xf32>
    %cst_17 = arith.constant 1.000000e+00 : f32
    %26 = vector.broadcast %cst_17 : f32 to vector<2x32xf32>
    %27 = arith.addf %26, %25 : vector<2x32xf32>
    %28 = arith.divf %26, %27 : vector<2x32xf32>
    %29 = vector.extract_strided_slice %11 {offsets = [0, 64], sizes = [2, 32], strides = [1, 1]} : vector<2x96xf32> to vector<2x32xf32>
    %30 = vector.extract_strided_slice %12 {offsets = [0, 64], sizes = [2, 32], strides = [1, 1]} : vector<2x96xf32> to vector<2x32xf32>
    %31 = vector.broadcast %5 : vector<1x32xf32> to vector<2x32xf32>
    %32 = arith.addf %30, %31 : vector<2x32xf32>
    %33 = arith.mulf %20, %32 : vector<2x32xf32>
    %34 = arith.addf %29, %33 : vector<2x32xf32>
    %35 = math.tanh %34 : vector<2x32xf32>
    %cst_18 = arith.constant 1.000000e+00 : f32
    %36 = vector.broadcast %cst_18 : f32 to vector<2x32xf32>
    %37 = arith.subf %36, %28 : vector<2x32xf32>
    %38 = arith.mulf %37, %35 : vector<2x32xf32>
    %39 = arith.mulf %28, %8 : vector<2x32xf32>
    %40 = arith.addf %38, %39 : vector<2x32xf32>
    %c1_19 = arith.constant 1 : index
    %c7 = arith.constant 7 : index
    %c0_20 = arith.constant 0 : index
    %c0_21 = arith.constant 0 : index
    %41 = vector.load %arg0[%c1_19, %c7, %c0_20, %c0_21] : memref<2x8x2x96xf32, #tpu.memory_space<vmem>>, vector<1x1x2x96xf32>
    %42 = vector.shape_cast %41 : vector<1x1x2x96xf32> to vector<2x96xf32>
    %cst_22 = arith.constant dense<0.000000e+00> : vector<2x96xf32>
    %43 = tpu.matmul %9, %3, %cst_22 {dimension_numbers = #tpu.dot_dimension_numbers<[1], [0], [0], [1], [0, 0, 1, 1], [], []>} : vector<2x32xf32>, vector<32x96xf32>, vector<2x96xf32> -> vector<2x96xf32>
    %44 = vector.extract_strided_slice %42 {offsets = [0, 0], sizes = [2, 32], strides = [1, 1]} : vector<2x96xf32> to vector<2x32xf32>
    %45 = vector.extract_strided_slice %43 {offsets = [0, 0], sizes = [2, 32], strides = [1, 1]} : vector<2x96xf32> to vector<2x32xf32>
    %46 = arith.addf %44, %45 : vector<2x32xf32>
    %47 = arith.negf %46 : vector<2x32xf32>
    %48 = math.exp %47 : vector<2x32xf32>
    %cst_23 = arith.constant 1.000000e+00 : f32
    %49 = vector.broadcast %cst_23 : f32 to vector<2x32xf32>
    %50 = arith.addf %49, %48 : vector<2x32xf32>
    %51 = arith.divf %49, %50 : vector<2x32xf32>
    %52 = vector.extract_strided_slice %42 {offsets = [0, 32], sizes = [2, 32], strides = [1, 1]} : vector<2x96xf32> to vector<2x32xf32>
    %53 = vector.extract_strided_slice %43 {offsets = [0, 32], sizes = [2, 32], strides = [1, 1]} : vector<2x96xf32> to vector<2x32xf32>
    %54 = arith.addf %52, %53 : vector<2x32xf32>
    %55 = arith.negf %54 : vector<2x32xf32>
    %56 = math.exp %55 : vector<2x32xf32>
    %cst_24 = arith.constant 1.000000e+00 : f32
    %57 = vector.broadcast %cst_24 : f32 to vector<2x32xf32>
    %58 = arith.addf %57, %56 : vector<2x32xf32>
    %59 = arith.divf %57, %58 : vector<2x32xf32>
    %60 = vector.extract_strided_slice %42 {offsets = [0, 64], sizes = [2, 32], strides = [1, 1]} : vector<2x96xf32> to vector<2x32xf32>
    %61 = vector.extract_strided_slice %43 {offsets = [0, 64], sizes = [2, 32], strides = [1, 1]} : vector<2x96xf32> to vector<2x32xf32>
    %62 = vector.broadcast %7 : vector<1x32xf32> to vector<2x32xf32>
    %63 = arith.addf %61, %62 : vector<2x32xf32>
    %64 = arith.mulf %51, %63 : vector<2x32xf32>
    %65 = arith.addf %60, %64 : vector<2x32xf32>
    %66 = math.tanh %65 : vector<2x32xf32>
    %cst_25 = arith.constant 1.000000e+00 : f32
    %67 = vector.broadcast %cst_25 : f32 to vector<2x32xf32>
    %68 = arith.subf %67, %59 : vector<2x32xf32>
    %69 = arith.mulf %68, %66 : vector<2x32xf32>
    %70 = arith.mulf %59, %9 : vector<2x32xf32>
    %71 = arith.addf %69, %70 : vector<2x32xf32>
    %c0_26 = arith.constant 0 : index
    %c0_27 = arith.constant 0 : index
    %c0_28 = arith.constant 0 : index
    %72 = vector.load %arg5[%c0_26, %c0_27, %c0_28] : memref<8x2x64xf32, #tpu.memory_space<vmem>>, vector<1x2x32xf32>
    %73 = vector.shape_cast %72 : vector<1x2x32xf32> to vector<2x32xf32>
    %74 = vector.shape_cast %40 : vector<2x32xf32> to vector<1x2x32xf32>
    tpu.vector_store %arg5[%c0_26, %c0_27, %c0_28], %74 {strides = array<i32>} : memref<8x2x64xf32, #tpu.memory_space<vmem>>, vector<1x2x32xf32>,
    %c7_29 = arith.constant 7 : index
    %c0_30 = arith.constant 0 : index
    %c32 = arith.constant 32 : index
    %75 = vector.load %arg5[%c7_29, %c0_30, %c32] : memref<8x2x64xf32, #tpu.memory_space<vmem>>, vector<1x2x32xf32>
    %76 = vector.shape_cast %75 : vector<1x2x32xf32> to vector<2x32xf32>
    %77 = vector.shape_cast %71 : vector<2x32xf32> to vector<1x2x32xf32>
    tpu.vector_store %arg5[%c7_29, %c0_30, %c32], %77 {strides = array<i32>} : memref<8x2x64xf32, #tpu.memory_space<vmem>>, vector<1x2x32xf32>,
    %c0_31 = arith.constant 0 : index
    %c1_32 = arith.constant 1 : index
    %c0_33 = arith.constant 0 : index
    %c0_34 = arith.constant 0 : index
    %78 = vector.load %arg0[%c0_31, %c1_32, %c0_33, %c0_34] : memref<2x8x2x96xf32, #tpu.memory_space<vmem>>, vector<1x1x2x96xf32>
    %79 = vector.shape_cast %78 : vector<1x1x2x96xf32> to vector<2x96xf32>
    %cst_35 = arith.constant dense<0.000000e+00> : vector<2x96xf32>
    %80 = tpu.matmul %40, %1, %cst_35 {dimension_numbers = #tpu.dot_dimension_numbers<[1], [0], [0], [1], [0, 0, 1, 1], [], []>} : vector<2x32xf32>, vector<32x96xf32>, vector<2x96xf32> -> vector<2x96xf32>
    %81 = vector.extract_strided_slice %79 {offsets = [0, 0], sizes = [2, 32], strides = [1, 1]} : vector<2x96xf32> to vector<2x32xf32>
    %82 = vector.extract_strided_slice %80 {offsets = [0, 0], sizes = [2, 32], strides = [1, 1]} : vector<2x96xf32> to vector<2x32xf32>
    %83 = arith.addf %81, %82 : vector<2x32xf32>
    %84 = arith.negf %83 : vector<2x32xf32>
    %85 = math.exp %84 : vector<2x32xf32>
    %cst_36 = arith.constant 1.000000e+00 : f32
    %86 = vector.broadcast %cst_36 : f32 to vector<2x32xf32>
    %87 = arith.addf %86, %85 : vector<2x32xf32>
    %88 = arith.divf %86, %87 : vector<2x32xf32>
    %89 = vector.extract_strided_slice %79 {offsets = [0, 32], sizes = [2, 32], strides = [1, 1]} : vector<2x96xf32> to vector<2x32xf32>
    %90 = vector.extract_strided_slice %80 {offsets = [0, 32], sizes = [2, 32], strides = [1, 1]} : vector<2x96xf32> to vector<2x32xf32>
    %91 = arith.addf %89, %90 : vector<2x32xf32>
    %92 = arith.negf %91 : vector<2x32xf32>
    %93 = math.exp %92 : vector<2x32xf32>
    %cst_37 = arith.constant 1.000000e+00 : f32
    %94 = vector.broadcast %cst_37 : f32 to vector<2x32xf32>
    %95 = arith.addf %94, %93 : vector<2x32xf32>
    %96 = arith.divf %94, %95 : vector<2x32xf32>
    %97 = vector.extract_strided_slice %79 {offsets = [0, 64], sizes = [2, 32], strides = [1, 1]} : vector<2x96xf32> to vector<2x32xf32>
    %98 = vector.extract_strided_slice %80 {offsets = [0, 64], sizes = [2, 32], strides = [1, 1]} : vector<2x96xf32> to vector<2x32xf32>
    %99 = vector.broadcast %5 : vector<1x32xf32> to vector<2x32xf32>
    %100 = arith.addf %98, %99 : vector<2x32xf32>
    %101 = arith.mulf %88, %100 : vector<2x32xf32>
    %102 = arith.addf %97, %101 : vector<2x32xf32>
    %103 = math.tanh %102 : vector<2x32xf32>
    %cst_38 = arith.constant 1.000000e+00 : f32
    %104 = vector.broadcast %cst_38 : f32 to vector<2x32xf32>
    %105 = arith.subf %104, %96 : vector<2x32xf32>
    %106 = arith.mulf %105, %103 : vector<2x32xf32>
    %107 = arith.mulf %96, %40 : vector<2x32xf32>
    %108 = arith.addf %106, %107 : vector<2x32xf32>
    %c1_39 = arith.constant 1 : index
    %c6 = arith.constant 6 : index
    %c0_40 = arith.constant 0 : index
    %c0_41 = arith.constant 0 : index
    %109 = vector.load %arg0[%c1_39, %c6, %c0_40, %c0_41] : memref<2x8x2x96xf32, #tpu.memory_space<vmem>>, vector<1x1x2x96xf32>
    %110 = vector.shape_cast %109 : vector<1x1x2x96xf32> to vector<2x96xf32>
    %cst_42 = arith.constant dense<0.000000e+00> : vector<2x96xf32>
    %111 = tpu.matmul %71, %3, %cst_42 {dimension_numbers = #tpu.dot_dimension_numbers<[1], [0], [0], [1], [0, 0, 1, 1], [], []>} : vector<2x32xf32>, vector<32x96xf32>, vector<2x96xf32> -> vector<2x96xf32>
    %112 = vector.extract_strided_slice %110 {offsets = [0, 0], sizes = [2, 32], strides = [1, 1]} : vector<2x96xf32> to vector<2x32xf32>
    %113 = vector.extract_strided_slice %111 {offsets = [0, 0], sizes = [2, 32], strides = [1, 1]} : vector<2x96xf32> to vector<2x32xf32>
    %114 = arith.addf %112, %113 : vector<2x32xf32>
    %115 = arith.negf %114 : vector<2x32xf32>
    %116 = math.exp %115 : vector<2x32xf32>
    %cst_43 = arith.constant 1.000000e+00 : f32
    %117 = vector.broadcast %cst_43 : f32 to vector<2x32xf32>
    %118 = arith.addf %117, %116 : vector<2x32xf32>
    %119 = arith.divf %117, %118 : vector<2x32xf32>
    %120 = vector.extract_strided_slice %110 {offsets = [0, 32], sizes = [2, 32], strides = [1, 1]} : vector<2x96xf32> to vector<2x32xf32>
    %121 = vector.extract_strided_slice %111 {offsets = [0, 32], sizes = [2, 32], strides = [1, 1]} : vector<2x96xf32> to vector<2x32xf32>
    %122 = arith.addf %120, %121 : vector<2x32xf32>
    %123 = arith.negf %122 : vector<2x32xf32>
    %124 = math.exp %123 : vector<2x32xf32>
    %cst_44 = arith.constant 1.000000e+00 : f32
    %125 = vector.broadcast %cst_44 : f32 to vector<2x32xf32>
    %126 = arith.addf %125, %124 : vector<2x32xf32>
    %127 = arith.divf %125, %126 : vector<2x32xf32>
    %128 = vector.extract_strided_slice %110 {offsets = [0, 64], sizes = [2, 32], strides = [1, 1]} : vector<2x96xf32> to vector<2x32xf32>
    %129 = vector.extract_strided_slice %111 {offsets = [0, 64], sizes = [2, 32], strides = [1, 1]} : vector<2x96xf32> to vector<2x32xf32>
    %130 = vector.broadcast %7 : vector<1x32xf32> to vector<2x32xf32>
    %131 = arith.addf %129, %130 : vector<2x32xf32>
    %132 = arith.mulf %119, %131 : vector<2x32xf32>
    %133 = arith.addf %128, %132 : vector<2x32xf32>
    %134 = math.tanh %133 : vector<2x32xf32>
    %cst_45 = arith.constant 1.000000e+00 : f32
    %135 = vector.broadcast %cst_45 : f32 to vector<2x32xf32>
    %136 = arith.subf %135, %127 : vector<2x32xf32>
    %137 = arith.mulf %136, %134 : vector<2x32xf32>
    %138 = arith.mulf %127, %71 : vector<2x32xf32>
    %139 = arith.addf %137, %138 : vector<2x32xf32>
    %c1_46 = arith.constant 1 : index
    %c0_47 = arith.constant 0 : index
    %c0_48 = arith.constant 0 : index
    %140 = vector.load %arg5[%c1_46, %c0_47, %c0_48] : memref<8x2x64xf32, #tpu.memory_space<vmem>>, vector<1x2x32xf32>
    %141 = vector.shape_cast %140 : vector<1x2x32xf32> to vector<2x32xf32>
    %142 = vector.shape_cast %108 : vector<2x32xf32> to vector<1x2x32xf32>
    tpu.vector_store %arg5[%c1_46, %c0_47, %c0_48], %142 {strides = array<i32>} : memref<8x2x64xf32, #tpu.memory_space<vmem>>, vector<1x2x32xf32>,
    %c6_49 = arith.constant 6 : index
    %c0_50 = arith.constant 0 : index
    %c32_51 = arith.constant 32 : index
    %143 = vector.load %arg5[%c6_49, %c0_50, %c32_51] : memref<8x2x64xf32, #tpu.memory_space<vmem>>, vector<1x2x32xf32>
    %144 = vector.shape_cast %143 : vector<1x2x32xf32> to vector<2x32xf32>
    %145 = vector.shape_cast %139 : vector<2x32xf32> to vector<1x2x32xf32>
    tpu.vector_store %arg5[%c6_49, %c0_50, %c32_51], %145 {strides = array<i32>} : memref<8x2x64xf32, #tpu.memory_space<vmem>>, vector<1x2x32xf32>,
    %c0_52 = arith.constant 0 : index
    %c2 = arith.constant 2 : index
    %c0_53 = arith.constant 0 : index
    %c0_54 = arith.constant 0 : index
    %146 = vector.load %arg0[%c0_52, %c2, %c0_53, %c0_54] : memref<2x8x2x96xf32, #tpu.memory_space<vmem>>, vector<1x1x2x96xf32>
    %147 = vector.shape_cast %146 : vector<1x1x2x96xf32> to vector<2x96xf32>
    %cst_55 = arith.constant dense<0.000000e+00> : vector<2x96xf32>
    %148 = tpu.matmul %108, %1, %cst_55 {dimension_numbers = #tpu.dot_dimension_numbers<[1], [0], [0], [1], [0, 0, 1, 1], [], []>} : vector<2x32xf32>, vector<32x96xf32>, vector<2x96xf32> -> vector<2x96xf32>
    %149 = vector.extract_strided_slice %147 {offsets = [0, 0], sizes = [2, 32], strides = [1, 1]} : vector<2x96xf32> to vector<2x32xf32>
    %150 = vector.extract_strided_slice %148 {offsets = [0, 0], sizes = [2, 32], strides = [1, 1]} : vector<2x96xf32> to vector<2x32xf32>
    %151 = arith.addf %149, %150 : vector<2x32xf32>
    %152 = arith.negf %151 : vector<2x32xf32>
    %153 = math.exp %152 : vector<2x32xf32>
    %cst_56 = arith.constant 1.000000e+00 : f32
    %154 = vector.broadcast %cst_56 : f32 to vector<2x32xf32>
    %155 = arith.addf %154, %153 : vector<2x32xf32>
    %156 = arith.divf %154, %155 : vector<2x32xf32>
    %157 = vector.extract_strided_slice %147 {offsets = [0, 32], sizes = [2, 32], strides = [1, 1]} : vector<2x96xf32> to vector<2x32xf32>
    %158 = vector.extract_strided_slice %148 {offsets = [0, 32], sizes = [2, 32], strides = [1, 1]} : vector<2x96xf32> to vector<2x32xf32>
    %159 = arith.addf %157, %158 : vector<2x32xf32>
    %160 = arith.negf %159 : vector<2x32xf32>
    %161 = math.exp %160 : vector<2x32xf32>
    %cst_57 = arith.constant 1.000000e+00 : f32
    %162 = vector.broadcast %cst_57 : f32 to vector<2x32xf32>
    %163 = arith.addf %162, %161 : vector<2x32xf32>
    %164 = arith.divf %162, %163 : vector<2x32xf32>
    %165 = vector.extract_strided_slice %147 {offsets = [0, 64], sizes = [2, 32], strides = [1, 1]} : vector<2x96xf32> to vector<2x32xf32>
    %166 = vector.extract_strided_slice %148 {offsets = [0, 64], sizes = [2, 32], strides = [1, 1]} : vector<2x96xf32> to vector<2x32xf32>
    %167 = vector.broadcast %5 : vector<1x32xf32> to vector<2x32xf32>
    %168 = arith.addf %166, %167 : vector<2x32xf32>
    %169 = arith.mulf %156, %168 : vector<2x32xf32>
    %170 = arith.addf %165, %169 : vector<2x32xf32>
    %171 = math.tanh %170 : vector<2x32xf32>
    %cst_58 = arith.constant 1.000000e+00 : f32
    %172 = vector.broadcast %cst_58 : f32 to vector<2x32xf32>
    %173 = arith.subf %172, %164 : vector<2x32xf32>
    %174 = arith.mulf %173, %171 : vector<2x32xf32>
    %175 = arith.mulf %164, %108 : vector<2x32xf32>
    %176 = arith.addf %174, %175 : vector<2x32xf32>
    %c1_59 = arith.constant 1 : index
    %c5 = arith.constant 5 : index
    %c0_60 = arith.constant 0 : index
    %c0_61 = arith.constant 0 : index
    %177 = vector.load %arg0[%c1_59, %c5, %c0_60, %c0_61] : memref<2x8x2x96xf32, #tpu.memory_space<vmem>>, vector<1x1x2x96xf32>
    %178 = vector.shape_cast %177 : vector<1x1x2x96xf32> to vector<2x96xf32>
    %cst_62 = arith.constant dense<0.000000e+00> : vector<2x96xf32>
    %179 = tpu.matmul %139, %3, %cst_62 {dimension_numbers = #tpu.dot_dimension_numbers<[1], [0], [0], [1], [0, 0, 1, 1], [], []>} : vector<2x32xf32>, vector<32x96xf32>, vector<2x96xf32> -> vector<2x96xf32>
    %180 = vector.extract_strided_slice %178 {offsets = [0, 0], sizes = [2, 32], strides = [1, 1]} : vector<2x96xf32> to vector<2x32xf32>
    %181 = vector.extract_strided_slice %179 {offsets = [0, 0], sizes = [2, 32], strides = [1, 1]} : vector<2x96xf32> to vector<2x32xf32>
    %182 = arith.addf %180, %181 : vector<2x32xf32>
    %183 = arith.negf %182 : vector<2x32xf32>
    %184 = math.exp %183 : vector<2x32xf32>
    %cst_63 = arith.constant 1.000000e+00 : f32
    %185 = vector.broadcast %cst_63 : f32 to vector<2x32xf32>
    %186 = arith.addf %185, %184 : vector<2x32xf32>
    %187 = arith.divf %185, %186 : vector<2x32xf32>
    %188 = vector.extract_strided_slice %178 {offsets = [0, 32], sizes = [2, 32], strides = [1, 1]} : vector<2x96xf32> to vector<2x32xf32>
    %189 = vector.extract_strided_slice %179 {offsets = [0, 32], sizes = [2, 32], strides = [1, 1]} : vector<2x96xf32> to vector<2x32xf32>
    %190 = arith.addf %188, %189 : vector<2x32xf32>
    %191 = arith.negf %190 : vector<2x32xf32>
    %192 = math.exp %191 : vector<2x32xf32>
    %cst_64 = arith.constant 1.000000e+00 : f32
    %193 = vector.broadcast %cst_64 : f32 to vector<2x32xf32>
    %194 = arith.addf %193, %192 : vector<2x32xf32>
    %195 = arith.divf %193, %194 : vector<2x32xf32>
    %196 = vector.extract_strided_slice %178 {offsets = [0, 64], sizes = [2, 32], strides = [1, 1]} : vector<2x96xf32> to vector<2x32xf32>
    %197 = vector.extract_strided_slice %179 {offsets = [0, 64], sizes = [2, 32], strides = [1, 1]} : vector<2x96xf32> to vector<2x32xf32>
    %198 = vector.broadcast %7 : vector<1x32xf32> to vector<2x32xf32>
    %199 = arith.addf %197, %198 : vector<2x32xf32>
    %200 = arith.mulf %187, %199 : vector<2x32xf32>
    %201 = arith.addf %196, %200 : vector<2x32xf32>
    %202 = math.tanh %201 : vector<2x32xf32>
    %cst_65 = arith.constant 1.000000e+00 : f32
    %203 = vector.broadcast %cst_65 : f32 to vector<2x32xf32>
    %204 = arith.subf %203, %195 : vector<2x32xf32>
    %205 = arith.mulf %204, %202 : vector<2x32xf32>
    %206 = arith.mulf %195, %139 : vector<2x32xf32>
    %207 = arith.addf %205, %206 : vector<2x32xf32>
    %c2_66 = arith.constant 2 : index
    %c0_67 = arith.constant 0 : index
    %c0_68 = arith.constant 0 : index
    %208 = vector.load %arg5[%c2_66, %c0_67, %c0_68] : memref<8x2x64xf32, #tpu.memory_space<vmem>>, vector<1x2x32xf32>
    %209 = vector.shape_cast %208 : vector<1x2x32xf32> to vector<2x32xf32>
    %210 = vector.shape_cast %176 : vector<2x32xf32> to vector<1x2x32xf32>
    tpu.vector_store %arg5[%c2_66, %c0_67, %c0_68], %210 {strides = array<i32>} : memref<8x2x64xf32, #tpu.memory_space<vmem>>, vector<1x2x32xf32>,
    %c5_69 = arith.constant 5 : index
    %c0_70 = arith.constant 0 : index
    %c32_71 = arith.constant 32 : index
    %211 = vector.load %arg5[%c5_69, %c0_70, %c32_71] : memref<8x2x64xf32, #tpu.memory_space<vmem>>, vector<1x2x32xf32>
    %212 = vector.shape_cast %211 : vector<1x2x32xf32> to vector<2x32xf32>
    %213 = vector.shape_cast %207 : vector<2x32xf32> to vector<1x2x32xf32>
    tpu.vector_store %arg5[%c5_69, %c0_70, %c32_71], %213 {strides = array<i32>} : memref<8x2x64xf32, #tpu.memory_space<vmem>>, vector<1x2x32xf32>,
    %c0_72 = arith.constant 0 : index
    %c3 = arith.constant 3 : index
    %c0_73 = arith.constant 0 : index
    %c0_74 = arith.constant 0 : index
    %214 = vector.load %arg0[%c0_72, %c3, %c0_73, %c0_74] : memref<2x8x2x96xf32, #tpu.memory_space<vmem>>, vector<1x1x2x96xf32>
    %215 = vector.shape_cast %214 : vector<1x1x2x96xf32> to vector<2x96xf32>
    %cst_75 = arith.constant dense<0.000000e+00> : vector<2x96xf32>
    %216 = tpu.matmul %176, %1, %cst_75 {dimension_numbers = #tpu.dot_dimension_numbers<[1], [0], [0], [1], [0, 0, 1, 1], [], []>} : vector<2x32xf32>, vector<32x96xf32>, vector<2x96xf32> -> vector<2x96xf32>
    %217 = vector.extract_strided_slice %215 {offsets = [0, 0], sizes = [2, 32], strides = [1, 1]} : vector<2x96xf32> to vector<2x32xf32>
    %218 = vector.extract_strided_slice %216 {offsets = [0, 0], sizes = [2, 32], strides = [1, 1]} : vector<2x96xf32> to vector<2x32xf32>
    %219 = arith.addf %217, %218 : vector<2x32xf32>
    %220 = arith.negf %219 : vector<2x32xf32>
    %221 = math.exp %220 : vector<2x32xf32>
    %cst_76 = arith.constant 1.000000e+00 : f32
    %222 = vector.broadcast %cst_76 : f32 to vector<2x32xf32>
    %223 = arith.addf %222, %221 : vector<2x32xf32>
    %224 = arith.divf %222, %223 : vector<2x32xf32>
    %225 = vector.extract_strided_slice %215 {offsets = [0, 32], sizes = [2, 32], strides = [1, 1]} : vector<2x96xf32> to vector<2x32xf32>
    %226 = vector.extract_strided_slice %216 {offsets = [0, 32], sizes = [2, 32], strides = [1, 1]} : vector<2x96xf32> to vector<2x32xf32>
    %227 = arith.addf %225, %226 : vector<2x32xf32>
    %228 = arith.negf %227 : vector<2x32xf32>
    %229 = math.exp %228 : vector<2x32xf32>
    %cst_77 = arith.constant 1.000000e+00 : f32
    %230 = vector.broadcast %cst_77 : f32 to vector<2x32xf32>
    %231 = arith.addf %230, %229 : vector<2x32xf32>
    %232 = arith.divf %230, %231 : vector<2x32xf32>
    %233 = vector.extract_strided_slice %215 {offsets = [0, 64], sizes = [2, 32], strides = [1, 1]} : vector<2x96xf32> to vector<2x32xf32>
    %234 = vector.extract_strided_slice %216 {offsets = [0, 64], sizes = [2, 32], strides = [1, 1]} : vector<2x96xf32> to vector<2x32xf32>
    %235 = vector.broadcast %5 : vector<1x32xf32> to vector<2x32xf32>
    %236 = arith.addf %234, %235 : vector<2x32xf32>
    %237 = arith.mulf %224, %236 : vector<2x32xf32>
    %238 = arith.addf %233, %237 : vector<2x32xf32>
    %239 = math.tanh %238 : vector<2x32xf32>
    %cst_78 = arith.constant 1.000000e+00 : f32
    %240 = vector.broadcast %cst_78 : f32 to vector<2x32xf32>
    %241 = arith.subf %240, %232 : vector<2x32xf32>
    %242 = arith.mulf %241, %239 : vector<2x32xf32>
    %243 = arith.mulf %232, %176 : vector<2x32xf32>
    %244 = arith.addf %242, %243 : vector<2x32xf32>
    %c1_79 = arith.constant 1 : index
    %c4 = arith.constant 4 : index
    %c0_80 = arith.constant 0 : index
    %c0_81 = arith.constant 0 : index
    %245 = vector.load %arg0[%c1_79, %c4, %c0_80, %c0_81] : memref<2x8x2x96xf32, #tpu.memory_space<vmem>>, vector<1x1x2x96xf32>
    %246 = vector.shape_cast %245 : vector<1x1x2x96xf32> to vector<2x96xf32>
    %cst_82 = arith.constant dense<0.000000e+00> : vector<2x96xf32>
    %247 = tpu.matmul %207, %3, %cst_82 {dimension_numbers = #tpu.dot_dimension_numbers<[1], [0], [0], [1], [0, 0, 1, 1], [], []>} : vector<2x32xf32>, vector<32x96xf32>, vector<2x96xf32> -> vector<2x96xf32>
    %248 = vector.extract_strided_slice %246 {offsets = [0, 0], sizes = [2, 32], strides = [1, 1]} : vector<2x96xf32> to vector<2x32xf32>
    %249 = vector.extract_strided_slice %247 {offsets = [0, 0], sizes = [2, 32], strides = [1, 1]} : vector<2x96xf32> to vector<2x32xf32>
    %250 = arith.addf %248, %249 : vector<2x32xf32>
    %251 = arith.negf %250 : vector<2x32xf32>
    %252 = math.exp %251 : vector<2x32xf32>
    %cst_83 = arith.constant 1.000000e+00 : f32
    %253 = vector.broadcast %cst_83 : f32 to vector<2x32xf32>
    %254 = arith.addf %253, %252 : vector<2x32xf32>
    %255 = arith.divf %253, %254 : vector<2x32xf32>
    %256 = vector.extract_strided_slice %246 {offsets = [0, 32], sizes = [2, 32], strides = [1, 1]} : vector<2x96xf32> to vector<2x32xf32>
    %257 = vector.extract_strided_slice %247 {offsets = [0, 32], sizes = [2, 32], strides = [1, 1]} : vector<2x96xf32> to vector<2x32xf32>
    %258 = arith.addf %256, %257 : vector<2x32xf32>
    %259 = arith.negf %258 : vector<2x32xf32>
    %260 = math.exp %259 : vector<2x32xf32>
    %cst_84 = arith.constant 1.000000e+00 : f32
    %261 = vector.broadcast %cst_84 : f32 to vector<2x32xf32>
    %262 = arith.addf %261, %260 : vector<2x32xf32>
    %263 = arith.divf %261, %262 : vector<2x32xf32>
    %264 = vector.extract_strided_slice %246 {offsets = [0, 64], sizes = [2, 32], strides = [1, 1]} : vector<2x96xf32> to vector<2x32xf32>
    %265 = vector.extract_strided_slice %247 {offsets = [0, 64], sizes = [2, 32], strides = [1, 1]} : vector<2x96xf32> to vector<2x32xf32>
    %266 = vector.broadcast %7 : vector<1x32xf32> to vector<2x32xf32>
    %267 = arith.addf %265, %266 : vector<2x32xf32>
    %268 = arith.mulf %255, %267 : vector<2x32xf32>
    %269 = arith.addf %264, %268 : vector<2x32xf32>
    %270 = math.tanh %269 : vector<2x32xf32>
    %cst_85 = arith.constant 1.000000e+00 : f32
    %271 = vector.broadcast %cst_85 : f32 to vector<2x32xf32>
    %272 = arith.subf %271, %263 : vector<2x32xf32>
    %273 = arith.mulf %272, %270 : vector<2x32xf32>
    %274 = arith.mulf %263, %207 : vector<2x32xf32>
    %275 = arith.addf %273, %274 : vector<2x32xf32>
    %c3_86 = arith.constant 3 : index
    %c0_87 = arith.constant 0 : index
    %c0_88 = arith.constant 0 : index
    %276 = vector.load %arg5[%c3_86, %c0_87, %c0_88] : memref<8x2x64xf32, #tpu.memory_space<vmem>>, vector<1x2x32xf32>
    %277 = vector.shape_cast %276 : vector<1x2x32xf32> to vector<2x32xf32>
    %278 = vector.shape_cast %244 : vector<2x32xf32> to vector<1x2x32xf32>
    tpu.vector_store %arg5[%c3_86, %c0_87, %c0_88], %278 {strides = array<i32>} : memref<8x2x64xf32, #tpu.memory_space<vmem>>, vector<1x2x32xf32>,
    %c4_89 = arith.constant 4 : index
    %c0_90 = arith.constant 0 : index
    %c32_91 = arith.constant 32 : index
    %279 = vector.load %arg5[%c4_89, %c0_90, %c32_91] : memref<8x2x64xf32, #tpu.memory_space<vmem>>, vector<1x2x32xf32>
    %280 = vector.shape_cast %279 : vector<1x2x32xf32> to vector<2x32xf32>
    %281 = vector.shape_cast %275 : vector<2x32xf32> to vector<1x2x32xf32>
    tpu.vector_store %arg5[%c4_89, %c0_90, %c32_91], %281 {strides = array<i32>} : memref<8x2x64xf32, #tpu.memory_space<vmem>>, vector<1x2x32xf32>,
    %c0_92 = arith.constant 0 : index
    %c4_93 = arith.constant 4 : index
    %c0_94 = arith.constant 0 : index
    %c0_95 = arith.constant 0 : index
    %282 = vector.load %arg0[%c0_92, %c4_93, %c0_94, %c0_95] : memref<2x8x2x96xf32, #tpu.memory_space<vmem>>, vector<1x1x2x96xf32>
    %283 = vector.shape_cast %282 : vector<1x1x2x96xf32> to vector<2x96xf32>
    %cst_96 = arith.constant dense<0.000000e+00> : vector<2x96xf32>
    %284 = tpu.matmul %244, %1, %cst_96 {dimension_numbers = #tpu.dot_dimension_numbers<[1], [0], [0], [1], [0, 0, 1, 1], [], []>} : vector<2x32xf32>, vector<32x96xf32>, vector<2x96xf32> -> vector<2x96xf32>
    %285 = vector.extract_strided_slice %283 {offsets = [0, 0], sizes = [2, 32], strides = [1, 1]} : vector<2x96xf32> to vector<2x32xf32>
    %286 = vector.extract_strided_slice %284 {offsets = [0, 0], sizes = [2, 32], strides = [1, 1]} : vector<2x96xf32> to vector<2x32xf32>
    %287 = arith.addf %285, %286 : vector<2x32xf32>
    %288 = arith.negf %287 : vector<2x32xf32>
    %289 = math.exp %288 : vector<2x32xf32>
    %cst_97 = arith.constant 1.000000e+00 : f32
    %290 = vector.broadcast %cst_97 : f32 to vector<2x32xf32>
    %291 = arith.addf %290, %289 : vector<2x32xf32>
    %292 = arith.divf %290, %291 : vector<2x32xf32>
    %293 = vector.extract_strided_slice %283 {offsets = [0, 32], sizes = [2, 32], strides = [1, 1]} : vector<2x96xf32> to vector<2x32xf32>
    %294 = vector.extract_strided_slice %284 {offsets = [0, 32], sizes = [2, 32], strides = [1, 1]} : vector<2x96xf32> to vector<2x32xf32>
    %295 = arith.addf %293, %294 : vector<2x32xf32>
    %296 = arith.negf %295 : vector<2x32xf32>
    %297 = math.exp %296 : vector<2x32xf32>
    %cst_98 = arith.constant 1.000000e+00 : f32
    %298 = vector.broadcast %cst_98 : f32 to vector<2x32xf32>
    %299 = arith.addf %298, %297 : vector<2x32xf32>
    %300 = arith.divf %298, %299 : vector<2x32xf32>
    %301 = vector.extract_strided_slice %283 {offsets = [0, 64], sizes = [2, 32], strides = [1, 1]} : vector<2x96xf32> to vector<2x32xf32>
    %302 = vector.extract_strided_slice %284 {offsets = [0, 64], sizes = [2, 32], strides = [1, 1]} : vector<2x96xf32> to vector<2x32xf32>
    %303 = vector.broadcast %5 : vector<1x32xf32> to vector<2x32xf32>
    %304 = arith.addf %302, %303 : vector<2x32xf32>
    %305 = arith.mulf %292, %304 : vector<2x32xf32>
    %306 = arith.addf %301, %305 : vector<2x32xf32>
    %307 = math.tanh %306 : vector<2x32xf32>
    %cst_99 = arith.constant 1.000000e+00 : f32
    %308 = vector.broadcast %cst_99 : f32 to vector<2x32xf32>
    %309 = arith.subf %308, %300 : vector<2x32xf32>
    %310 = arith.mulf %309, %307 : vector<2x32xf32>
    %311 = arith.mulf %300, %244 : vector<2x32xf32>
    %312 = arith.addf %310, %311 : vector<2x32xf32>
    %c1_100 = arith.constant 1 : index
    %c3_101 = arith.constant 3 : index
    %c0_102 = arith.constant 0 : index
    %c0_103 = arith.constant 0 : index
    %313 = vector.load %arg0[%c1_100, %c3_101, %c0_102, %c0_103] : memref<2x8x2x96xf32, #tpu.memory_space<vmem>>, vector<1x1x2x96xf32>
    %314 = vector.shape_cast %313 : vector<1x1x2x96xf32> to vector<2x96xf32>
    %cst_104 = arith.constant dense<0.000000e+00> : vector<2x96xf32>
    %315 = tpu.matmul %275, %3, %cst_104 {dimension_numbers = #tpu.dot_dimension_numbers<[1], [0], [0], [1], [0, 0, 1, 1], [], []>} : vector<2x32xf32>, vector<32x96xf32>, vector<2x96xf32> -> vector<2x96xf32>
    %316 = vector.extract_strided_slice %314 {offsets = [0, 0], sizes = [2, 32], strides = [1, 1]} : vector<2x96xf32> to vector<2x32xf32>
    %317 = vector.extract_strided_slice %315 {offsets = [0, 0], sizes = [2, 32], strides = [1, 1]} : vector<2x96xf32> to vector<2x32xf32>
    %318 = arith.addf %316, %317 : vector<2x32xf32>
    %319 = arith.negf %318 : vector<2x32xf32>
    %320 = math.exp %319 : vector<2x32xf32>
    %cst_105 = arith.constant 1.000000e+00 : f32
    %321 = vector.broadcast %cst_105 : f32 to vector<2x32xf32>
    %322 = arith.addf %321, %320 : vector<2x32xf32>
    %323 = arith.divf %321, %322 : vector<2x32xf32>
    %324 = vector.extract_strided_slice %314 {offsets = [0, 32], sizes = [2, 32], strides = [1, 1]} : vector<2x96xf32> to vector<2x32xf32>
    %325 = vector.extract_strided_slice %315 {offsets = [0, 32], sizes = [2, 32], strides = [1, 1]} : vector<2x96xf32> to vector<2x32xf32>
    %326 = arith.addf %324, %325 : vector<2x32xf32>
    %327 = arith.negf %326 : vector<2x32xf32>
    %328 = math.exp %327 : vector<2x32xf32>
    %cst_106 = arith.constant 1.000000e+00 : f32
    %329 = vector.broadcast %cst_106 : f32 to vector<2x32xf32>
    %330 = arith.addf %329, %328 : vector<2x32xf32>
    %331 = arith.divf %329, %330 : vector<2x32xf32>
    %332 = vector.extract_strided_slice %314 {offsets = [0, 64], sizes = [2, 32], strides = [1, 1]} : vector<2x96xf32> to vector<2x32xf32>
    %333 = vector.extract_strided_slice %315 {offsets = [0, 64], sizes = [2, 32], strides = [1, 1]} : vector<2x96xf32> to vector<2x32xf32>
    %334 = vector.broadcast %7 : vector<1x32xf32> to vector<2x32xf32>
    %335 = arith.addf %333, %334 : vector<2x32xf32>
    %336 = arith.mulf %323, %335 : vector<2x32xf32>
    %337 = arith.addf %332, %336 : vector<2x32xf32>
    %338 = math.tanh %337 : vector<2x32xf32>
    %cst_107 = arith.constant 1.000000e+00 : f32
    %339 = vector.broadcast %cst_107 : f32 to vector<2x32xf32>
    %340 = arith.subf %339, %331 : vector<2x32xf32>
    %341 = arith.mulf %340, %338 : vector<2x32xf32>
    %342 = arith.mulf %331, %275 : vector<2x32xf32>
    %343 = arith.addf %341, %342 : vector<2x32xf32>
    %c4_108 = arith.constant 4 : index
    %c0_109 = arith.constant 0 : index
    %c0_110 = arith.constant 0 : index
    %344 = vector.load %arg5[%c4_108, %c0_109, %c0_110] : memref<8x2x64xf32, #tpu.memory_space<vmem>>, vector<1x2x32xf32>
    %345 = vector.shape_cast %344 : vector<1x2x32xf32> to vector<2x32xf32>
    %346 = vector.shape_cast %312 : vector<2x32xf32> to vector<1x2x32xf32>
    tpu.vector_store %arg5[%c4_108, %c0_109, %c0_110], %346 {strides = array<i32>} : memref<8x2x64xf32, #tpu.memory_space<vmem>>, vector<1x2x32xf32>,
    %c3_111 = arith.constant 3 : index
    %c0_112 = arith.constant 0 : index
    %c32_113 = arith.constant 32 : index
    %347 = vector.load %arg5[%c3_111, %c0_112, %c32_113] : memref<8x2x64xf32, #tpu.memory_space<vmem>>, vector<1x2x32xf32>
    %348 = vector.shape_cast %347 : vector<1x2x32xf32> to vector<2x32xf32>
    %349 = vector.shape_cast %343 : vector<2x32xf32> to vector<1x2x32xf32>
    tpu.vector_store %arg5[%c3_111, %c0_112, %c32_113], %349 {strides = array<i32>} : memref<8x2x64xf32, #tpu.memory_space<vmem>>, vector<1x2x32xf32>,
    %c0_114 = arith.constant 0 : index
    %c5_115 = arith.constant 5 : index
    %c0_116 = arith.constant 0 : index
    %c0_117 = arith.constant 0 : index
    %350 = vector.load %arg0[%c0_114, %c5_115, %c0_116, %c0_117] : memref<2x8x2x96xf32, #tpu.memory_space<vmem>>, vector<1x1x2x96xf32>
    %351 = vector.shape_cast %350 : vector<1x1x2x96xf32> to vector<2x96xf32>
    %cst_118 = arith.constant dense<0.000000e+00> : vector<2x96xf32>
    %352 = tpu.matmul %312, %1, %cst_118 {dimension_numbers = #tpu.dot_dimension_numbers<[1], [0], [0], [1], [0, 0, 1, 1], [], []>} : vector<2x32xf32>, vector<32x96xf32>, vector<2x96xf32> -> vector<2x96xf32>
    %353 = vector.extract_strided_slice %351 {offsets = [0, 0], sizes = [2, 32], strides = [1, 1]} : vector<2x96xf32> to vector<2x32xf32>
    %354 = vector.extract_strided_slice %352 {offsets = [0, 0], sizes = [2, 32], strides = [1, 1]} : vector<2x96xf32> to vector<2x32xf32>
    %355 = arith.addf %353, %354 : vector<2x32xf32>
    %356 = arith.negf %355 : vector<2x32xf32>
    %357 = math.exp %356 : vector<2x32xf32>
    %cst_119 = arith.constant 1.000000e+00 : f32
    %358 = vector.broadcast %cst_119 : f32 to vector<2x32xf32>
    %359 = arith.addf %358, %357 : vector<2x32xf32>
    %360 = arith.divf %358, %359 : vector<2x32xf32>
    %361 = vector.extract_strided_slice %351 {offsets = [0, 32], sizes = [2, 32], strides = [1, 1]} : vector<2x96xf32> to vector<2x32xf32>
    %362 = vector.extract_strided_slice %352 {offsets = [0, 32], sizes = [2, 32], strides = [1, 1]} : vector<2x96xf32> to vector<2x32xf32>
    %363 = arith.addf %361, %362 : vector<2x32xf32>
    %364 = arith.negf %363 : vector<2x32xf32>
    %365 = math.exp %364 : vector<2x32xf32>
    %cst_120 = arith.constant 1.000000e+00 : f32
    %366 = vector.broadcast %cst_120 : f32 to vector<2x32xf32>
    %367 = arith.addf %366, %365 : vector<2x32xf32>
    %368 = arith.divf %366, %367 : vector<2x32xf32>
    %369 = vector.extract_strided_slice %351 {offsets = [0, 64], sizes = [2, 32], strides = [1, 1]} : vector<2x96xf32> to vector<2x32xf32>
    %370 = vector.extract_strided_slice %352 {offsets = [0, 64], sizes = [2, 32], strides = [1, 1]} : vector<2x96xf32> to vector<2x32xf32>
    %371 = vector.broadcast %5 : vector<1x32xf32> to vector<2x32xf32>
    %372 = arith.addf %370, %371 : vector<2x32xf32>
    %373 = arith.mulf %360, %372 : vector<2x32xf32>
    %374 = arith.addf %369, %373 : vector<2x32xf32>
    %375 = math.tanh %374 : vector<2x32xf32>
    %cst_121 = arith.constant 1.000000e+00 : f32
    %376 = vector.broadcast %cst_121 : f32 to vector<2x32xf32>
    %377 = arith.subf %376, %368 : vector<2x32xf32>
    %378 = arith.mulf %377, %375 : vector<2x32xf32>
    %379 = arith.mulf %368, %312 : vector<2x32xf32>
    %380 = arith.addf %378, %379 : vector<2x32xf32>
    %c1_122 = arith.constant 1 : index
    %c2_123 = arith.constant 2 : index
    %c0_124 = arith.constant 0 : index
    %c0_125 = arith.constant 0 : index
    %381 = vector.load %arg0[%c1_122, %c2_123, %c0_124, %c0_125] : memref<2x8x2x96xf32, #tpu.memory_space<vmem>>, vector<1x1x2x96xf32>
    %382 = vector.shape_cast %381 : vector<1x1x2x96xf32> to vector<2x96xf32>
    %cst_126 = arith.constant dense<0.000000e+00> : vector<2x96xf32>
    %383 = tpu.matmul %343, %3, %cst_126 {dimension_numbers = #tpu.dot_dimension_numbers<[1], [0], [0], [1], [0, 0, 1, 1], [], []>} : vector<2x32xf32>, vector<32x96xf32>, vector<2x96xf32> -> vector<2x96xf32>
    %384 = vector.extract_strided_slice %382 {offsets = [0, 0], sizes = [2, 32], strides = [1, 1]} : vector<2x96xf32> to vector<2x32xf32>
    %385 = vector.extract_strided_slice %383 {offsets = [0, 0], sizes = [2, 32], strides = [1, 1]} : vector<2x96xf32> to vector<2x32xf32>
    %386 = arith.addf %384, %385 : vector<2x32xf32>
    %387 = arith.negf %386 : vector<2x32xf32>
    %388 = math.exp %387 : vector<2x32xf32>
    %cst_127 = arith.constant 1.000000e+00 : f32
    %389 = vector.broadcast %cst_127 : f32 to vector<2x32xf32>
    %390 = arith.addf %389, %388 : vector<2x32xf32>
    %391 = arith.divf %389, %390 : vector<2x32xf32>
    %392 = vector.extract_strided_slice %382 {offsets = [0, 32], sizes = [2, 32], strides = [1, 1]} : vector<2x96xf32> to vector<2x32xf32>
    %393 = vector.extract_strided_slice %383 {offsets = [0, 32], sizes = [2, 32], strides = [1, 1]} : vector<2x96xf32> to vector<2x32xf32>
    %394 = arith.addf %392, %393 : vector<2x32xf32>
    %395 = arith.negf %394 : vector<2x32xf32>
    %396 = math.exp %395 : vector<2x32xf32>
    %cst_128 = arith.constant 1.000000e+00 : f32
    %397 = vector.broadcast %cst_128 : f32 to vector<2x32xf32>
    %398 = arith.addf %397, %396 : vector<2x32xf32>
    %399 = arith.divf %397, %398 : vector<2x32xf32>
    %400 = vector.extract_strided_slice %382 {offsets = [0, 64], sizes = [2, 32], strides = [1, 1]} : vector<2x96xf32> to vector<2x32xf32>
    %401 = vector.extract_strided_slice %383 {offsets = [0, 64], sizes = [2, 32], strides = [1, 1]} : vector<2x96xf32> to vector<2x32xf32>
    %402 = vector.broadcast %7 : vector<1x32xf32> to vector<2x32xf32>
    %403 = arith.addf %401, %402 : vector<2x32xf32>
    %404 = arith.mulf %391, %403 : vector<2x32xf32>
    %405 = arith.addf %400, %404 : vector<2x32xf32>
    %406 = math.tanh %405 : vector<2x32xf32>
    %cst_129 = arith.constant 1.000000e+00 : f32
    %407 = vector.broadcast %cst_129 : f32 to vector<2x32xf32>
    %408 = arith.subf %407, %399 : vector<2x32xf32>
    %409 = arith.mulf %408, %406 : vector<2x32xf32>
    %410 = arith.mulf %399, %343 : vector<2x32xf32>
    %411 = arith.addf %409, %410 : vector<2x32xf32>
    %c5_130 = arith.constant 5 : index
    %c0_131 = arith.constant 0 : index
    %c0_132 = arith.constant 0 : index
    %412 = vector.load %arg5[%c5_130, %c0_131, %c0_132] : memref<8x2x64xf32, #tpu.memory_space<vmem>>, vector<1x2x32xf32>
    %413 = vector.shape_cast %412 : vector<1x2x32xf32> to vector<2x32xf32>
    %414 = vector.shape_cast %380 : vector<2x32xf32> to vector<1x2x32xf32>
    tpu.vector_store %arg5[%c5_130, %c0_131, %c0_132], %414 {strides = array<i32>} : memref<8x2x64xf32, #tpu.memory_space<vmem>>, vector<1x2x32xf32>,
    %c2_133 = arith.constant 2 : index
    %c0_134 = arith.constant 0 : index
    %c32_135 = arith.constant 32 : index
    %415 = vector.load %arg5[%c2_133, %c0_134, %c32_135] : memref<8x2x64xf32, #tpu.memory_space<vmem>>, vector<1x2x32xf32>
    %416 = vector.shape_cast %415 : vector<1x2x32xf32> to vector<2x32xf32>
    %417 = vector.shape_cast %411 : vector<2x32xf32> to vector<1x2x32xf32>
    tpu.vector_store %arg5[%c2_133, %c0_134, %c32_135], %417 {strides = array<i32>} : memref<8x2x64xf32, #tpu.memory_space<vmem>>, vector<1x2x32xf32>,
    %c0_136 = arith.constant 0 : index
    %c6_137 = arith.constant 6 : index
    %c0_138 = arith.constant 0 : index
    %c0_139 = arith.constant 0 : index
    %418 = vector.load %arg0[%c0_136, %c6_137, %c0_138, %c0_139] : memref<2x8x2x96xf32, #tpu.memory_space<vmem>>, vector<1x1x2x96xf32>
    %419 = vector.shape_cast %418 : vector<1x1x2x96xf32> to vector<2x96xf32>
    %cst_140 = arith.constant dense<0.000000e+00> : vector<2x96xf32>
    %420 = tpu.matmul %380, %1, %cst_140 {dimension_numbers = #tpu.dot_dimension_numbers<[1], [0], [0], [1], [0, 0, 1, 1], [], []>} : vector<2x32xf32>, vector<32x96xf32>, vector<2x96xf32> -> vector<2x96xf32>
    %421 = vector.extract_strided_slice %419 {offsets = [0, 0], sizes = [2, 32], strides = [1, 1]} : vector<2x96xf32> to vector<2x32xf32>
    %422 = vector.extract_strided_slice %420 {offsets = [0, 0], sizes = [2, 32], strides = [1, 1]} : vector<2x96xf32> to vector<2x32xf32>
    %423 = arith.addf %421, %422 : vector<2x32xf32>
    %424 = arith.negf %423 : vector<2x32xf32>
    %425 = math.exp %424 : vector<2x32xf32>
    %cst_141 = arith.constant 1.000000e+00 : f32
    %426 = vector.broadcast %cst_141 : f32 to vector<2x32xf32>
    %427 = arith.addf %426, %425 : vector<2x32xf32>
    %428 = arith.divf %426, %427 : vector<2x32xf32>
    %429 = vector.extract_strided_slice %419 {offsets = [0, 32], sizes = [2, 32], strides = [1, 1]} : vector<2x96xf32> to vector<2x32xf32>
    %430 = vector.extract_strided_slice %420 {offsets = [0, 32], sizes = [2, 32], strides = [1, 1]} : vector<2x96xf32> to vector<2x32xf32>
    %431 = arith.addf %429, %430 : vector<2x32xf32>
    %432 = arith.negf %431 : vector<2x32xf32>
    %433 = math.exp %432 : vector<2x32xf32>
    %cst_142 = arith.constant 1.000000e+00 : f32
    %434 = vector.broadcast %cst_142 : f32 to vector<2x32xf32>
    %435 = arith.addf %434, %433 : vector<2x32xf32>
    %436 = arith.divf %434, %435 : vector<2x32xf32>
    %437 = vector.extract_strided_slice %419 {offsets = [0, 64], sizes = [2, 32], strides = [1, 1]} : vector<2x96xf32> to vector<2x32xf32>
    %438 = vector.extract_strided_slice %420 {offsets = [0, 64], sizes = [2, 32], strides = [1, 1]} : vector<2x96xf32> to vector<2x32xf32>
    %439 = vector.broadcast %5 : vector<1x32xf32> to vector<2x32xf32>
    %440 = arith.addf %438, %439 : vector<2x32xf32>
    %441 = arith.mulf %428, %440 : vector<2x32xf32>
    %442 = arith.addf %437, %441 : vector<2x32xf32>
    %443 = math.tanh %442 : vector<2x32xf32>
    %cst_143 = arith.constant 1.000000e+00 : f32
    %444 = vector.broadcast %cst_143 : f32 to vector<2x32xf32>
    %445 = arith.subf %444, %436 : vector<2x32xf32>
    %446 = arith.mulf %445, %443 : vector<2x32xf32>
    %447 = arith.mulf %436, %380 : vector<2x32xf32>
    %448 = arith.addf %446, %447 : vector<2x32xf32>
    %c1_144 = arith.constant 1 : index
    %c1_145 = arith.constant 1 : index
    %c0_146 = arith.constant 0 : index
    %c0_147 = arith.constant 0 : index
    %449 = vector.load %arg0[%c1_144, %c1_145, %c0_146, %c0_147] : memref<2x8x2x96xf32, #tpu.memory_space<vmem>>, vector<1x1x2x96xf32>
    %450 = vector.shape_cast %449 : vector<1x1x2x96xf32> to vector<2x96xf32>
    %cst_148 = arith.constant dense<0.000000e+00> : vector<2x96xf32>
    %451 = tpu.matmul %411, %3, %cst_148 {dimension_numbers = #tpu.dot_dimension_numbers<[1], [0], [0], [1], [0, 0, 1, 1], [], []>} : vector<2x32xf32>, vector<32x96xf32>, vector<2x96xf32> -> vector<2x96xf32>
    %452 = vector.extract_strided_slice %450 {offsets = [0, 0], sizes = [2, 32], strides = [1, 1]} : vector<2x96xf32> to vector<2x32xf32>
    %453 = vector.extract_strided_slice %451 {offsets = [0, 0], sizes = [2, 32], strides = [1, 1]} : vector<2x96xf32> to vector<2x32xf32>
    %454 = arith.addf %452, %453 : vector<2x32xf32>
    %455 = arith.negf %454 : vector<2x32xf32>
    %456 = math.exp %455 : vector<2x32xf32>
    %cst_149 = arith.constant 1.000000e+00 : f32
    %457 = vector.broadcast %cst_149 : f32 to vector<2x32xf32>
    %458 = arith.addf %457, %456 : vector<2x32xf32>
    %459 = arith.divf %457, %458 : vector<2x32xf32>
    %460 = vector.extract_strided_slice %450 {offsets = [0, 32], sizes = [2, 32], strides = [1, 1]} : vector<2x96xf32> to vector<2x32xf32>
    %461 = vector.extract_strided_slice %451 {offsets = [0, 32], sizes = [2, 32], strides = [1, 1]} : vector<2x96xf32> to vector<2x32xf32>
    %462 = arith.addf %460, %461 : vector<2x32xf32>
    %463 = arith.negf %462 : vector<2x32xf32>
    %464 = math.exp %463 : vector<2x32xf32>
    %cst_150 = arith.constant 1.000000e+00 : f32
    %465 = vector.broadcast %cst_150 : f32 to vector<2x32xf32>
    %466 = arith.addf %465, %464 : vector<2x32xf32>
    %467 = arith.divf %465, %466 : vector<2x32xf32>
    %468 = vector.extract_strided_slice %450 {offsets = [0, 64], sizes = [2, 32], strides = [1, 1]} : vector<2x96xf32> to vector<2x32xf32>
    %469 = vector.extract_strided_slice %451 {offsets = [0, 64], sizes = [2, 32], strides = [1, 1]} : vector<2x96xf32> to vector<2x32xf32>
    %470 = vector.broadcast %7 : vector<1x32xf32> to vector<2x32xf32>
    %471 = arith.addf %469, %470 : vector<2x32xf32>
    %472 = arith.mulf %459, %471 : vector<2x32xf32>
    %473 = arith.addf %468, %472 : vector<2x32xf32>
    %474 = math.tanh %473 : vector<2x32xf32>
    %cst_151 = arith.constant 1.000000e+00 : f32
    %475 = vector.broadcast %cst_151 : f32 to vector<2x32xf32>
    %476 = arith.subf %475, %467 : vector<2x32xf32>
    %477 = arith.mulf %476, %474 : vector<2x32xf32>
    %478 = arith.mulf %467, %411 : vector<2x32xf32>
    %479 = arith.addf %477, %478 : vector<2x32xf32>
    %c6_152 = arith.constant 6 : index
    %c0_153 = arith.constant 0 : index
    %c0_154 = arith.constant 0 : index
    %480 = vector.load %arg5[%c6_152, %c0_153, %c0_154] : memref<8x2x64xf32, #tpu.memory_space<vmem>>, vector<1x2x32xf32>
    %481 = vector.shape_cast %480 : vector<1x2x32xf32> to vector<2x32xf32>
    %482 = vector.shape_cast %448 : vector<2x32xf32> to vector<1x2x32xf32>
    tpu.vector_store %arg5[%c6_152, %c0_153, %c0_154], %482 {strides = array<i32>} : memref<8x2x64xf32, #tpu.memory_space<vmem>>, vector<1x2x32xf32>,
    %c1_155 = arith.constant 1 : index
    %c0_156 = arith.constant 0 : index
    %c32_157 = arith.constant 32 : index
    %483 = vector.load %arg5[%c1_155, %c0_156, %c32_157] : memref<8x2x64xf32, #tpu.memory_space<vmem>>, vector<1x2x32xf32>
    %484 = vector.shape_cast %483 : vector<1x2x32xf32> to vector<2x32xf32>
    %485 = vector.shape_cast %479 : vector<2x32xf32> to vector<1x2x32xf32>
    tpu.vector_store %arg5[%c1_155, %c0_156, %c32_157], %485 {strides = array<i32>} : memref<8x2x64xf32, #tpu.memory_space<vmem>>, vector<1x2x32xf32>,
    %c0_158 = arith.constant 0 : index
    %c7_159 = arith.constant 7 : index
    %c0_160 = arith.constant 0 : index
    %c0_161 = arith.constant 0 : index
    %486 = vector.load %arg0[%c0_158, %c7_159, %c0_160, %c0_161] : memref<2x8x2x96xf32, #tpu.memory_space<vmem>>, vector<1x1x2x96xf32>
    %487 = vector.shape_cast %486 : vector<1x1x2x96xf32> to vector<2x96xf32>
    %cst_162 = arith.constant dense<0.000000e+00> : vector<2x96xf32>
    %488 = tpu.matmul %448, %1, %cst_162 {dimension_numbers = #tpu.dot_dimension_numbers<[1], [0], [0], [1], [0, 0, 1, 1], [], []>} : vector<2x32xf32>, vector<32x96xf32>, vector<2x96xf32> -> vector<2x96xf32>
    %489 = vector.extract_strided_slice %487 {offsets = [0, 0], sizes = [2, 32], strides = [1, 1]} : vector<2x96xf32> to vector<2x32xf32>
    %490 = vector.extract_strided_slice %488 {offsets = [0, 0], sizes = [2, 32], strides = [1, 1]} : vector<2x96xf32> to vector<2x32xf32>
    %491 = arith.addf %489, %490 : vector<2x32xf32>
    %492 = arith.negf %491 : vector<2x32xf32>
    %493 = math.exp %492 : vector<2x32xf32>
    %cst_163 = arith.constant 1.000000e+00 : f32
    %494 = vector.broadcast %cst_163 : f32 to vector<2x32xf32>
    %495 = arith.addf %494, %493 : vector<2x32xf32>
    %496 = arith.divf %494, %495 : vector<2x32xf32>
    %497 = vector.extract_strided_slice %487 {offsets = [0, 32], sizes = [2, 32], strides = [1, 1]} : vector<2x96xf32> to vector<2x32xf32>
    %498 = vector.extract_strided_slice %488 {offsets = [0, 32], sizes = [2, 32], strides = [1, 1]} : vector<2x96xf32> to vector<2x32xf32>
    %499 = arith.addf %497, %498 : vector<2x32xf32>
    %500 = arith.negf %499 : vector<2x32xf32>
    %501 = math.exp %500 : vector<2x32xf32>
    %cst_164 = arith.constant 1.000000e+00 : f32
    %502 = vector.broadcast %cst_164 : f32 to vector<2x32xf32>
    %503 = arith.addf %502, %501 : vector<2x32xf32>
    %504 = arith.divf %502, %503 : vector<2x32xf32>
    %505 = vector.extract_strided_slice %487 {offsets = [0, 64], sizes = [2, 32], strides = [1, 1]} : vector<2x96xf32> to vector<2x32xf32>
    %506 = vector.extract_strided_slice %488 {offsets = [0, 64], sizes = [2, 32], strides = [1, 1]} : vector<2x96xf32> to vector<2x32xf32>
    %507 = vector.broadcast %5 : vector<1x32xf32> to vector<2x32xf32>
    %508 = arith.addf %506, %507 : vector<2x32xf32>
    %509 = arith.mulf %496, %508 : vector<2x32xf32>
    %510 = arith.addf %505, %509 : vector<2x32xf32>
    %511 = math.tanh %510 : vector<2x32xf32>
    %cst_165 = arith.constant 1.000000e+00 : f32
    %512 = vector.broadcast %cst_165 : f32 to vector<2x32xf32>
    %513 = arith.subf %512, %504 : vector<2x32xf32>
    %514 = arith.mulf %513, %511 : vector<2x32xf32>
    %515 = arith.mulf %504, %448 : vector<2x32xf32>
    %516 = arith.addf %514, %515 : vector<2x32xf32>
    %c1_166 = arith.constant 1 : index
    %c0_167 = arith.constant 0 : index
    %c0_168 = arith.constant 0 : index
    %c0_169 = arith.constant 0 : index
    %517 = vector.load %arg0[%c1_166, %c0_167, %c0_168, %c0_169] : memref<2x8x2x96xf32, #tpu.memory_space<vmem>>, vector<1x1x2x96xf32>
    %518 = vector.shape_cast %517 : vector<1x1x2x96xf32> to vector<2x96xf32>
    %cst_170 = arith.constant dense<0.000000e+00> : vector<2x96xf32>
    %519 = tpu.matmul %479, %3, %cst_170 {dimension_numbers = #tpu.dot_dimension_numbers<[1], [0], [0], [1], [0, 0, 1, 1], [], []>} : vector<2x32xf32>, vector<32x96xf32>, vector<2x96xf32> -> vector<2x96xf32>
    %520 = vector.extract_strided_slice %518 {offsets = [0, 0], sizes = [2, 32], strides = [1, 1]} : vector<2x96xf32> to vector<2x32xf32>
    %521 = vector.extract_strided_slice %519 {offsets = [0, 0], sizes = [2, 32], strides = [1, 1]} : vector<2x96xf32> to vector<2x32xf32>
    %522 = arith.addf %520, %521 : vector<2x32xf32>
    %523 = arith.negf %522 : vector<2x32xf32>
    %524 = math.exp %523 : vector<2x32xf32>
    %cst_171 = arith.constant 1.000000e+00 : f32
    %525 = vector.broadcast %cst_171 : f32 to vector<2x32xf32>
    %526 = arith.addf %525, %524 : vector<2x32xf32>
    %527 = arith.divf %525, %526 : vector<2x32xf32>
    %528 = vector.extract_strided_slice %518 {offsets = [0, 32], sizes = [2, 32], strides = [1, 1]} : vector<2x96xf32> to vector<2x32xf32>
    %529 = vector.extract_strided_slice %519 {offsets = [0, 32], sizes = [2, 32], strides = [1, 1]} : vector<2x96xf32> to vector<2x32xf32>
    %530 = arith.addf %528, %529 : vector<2x32xf32>
    %531 = arith.negf %530 : vector<2x32xf32>
    %532 = math.exp %531 : vector<2x32xf32>
    %cst_172 = arith.constant 1.000000e+00 : f32
    %533 = vector.broadcast %cst_172 : f32 to vector<2x32xf32>
    %534 = arith.addf %533, %532 : vector<2x32xf32>
    %535 = arith.divf %533, %534 : vector<2x32xf32>
    %536 = vector.extract_strided_slice %518 {offsets = [0, 64], sizes = [2, 32], strides = [1, 1]} : vector<2x96xf32> to vector<2x32xf32>
    %537 = vector.extract_strided_slice %519 {offsets = [0, 64], sizes = [2, 32], strides = [1, 1]} : vector<2x96xf32> to vector<2x32xf32>
    %538 = vector.broadcast %7 : vector<1x32xf32> to vector<2x32xf32>
    %539 = arith.addf %537, %538 : vector<2x32xf32>
    %540 = arith.mulf %527, %539 : vector<2x32xf32>
    %541 = arith.addf %536, %540 : vector<2x32xf32>
    %542 = math.tanh %541 : vector<2x32xf32>
    %cst_173 = arith.constant 1.000000e+00 : f32
    %543 = vector.broadcast %cst_173 : f32 to vector<2x32xf32>
    %544 = arith.subf %543, %535 : vector<2x32xf32>
    %545 = arith.mulf %544, %542 : vector<2x32xf32>
    %546 = arith.mulf %535, %479 : vector<2x32xf32>
    %547 = arith.addf %545, %546 : vector<2x32xf32>
    %c7_174 = arith.constant 7 : index
    %c0_175 = arith.constant 0 : index
    %c0_176 = arith.constant 0 : index
    %548 = vector.load %arg5[%c7_174, %c0_175, %c0_176] : memref<8x2x64xf32, #tpu.memory_space<vmem>>, vector<1x2x32xf32>
    %549 = vector.shape_cast %548 : vector<1x2x32xf32> to vector<2x32xf32>
    %550 = vector.shape_cast %516 : vector<2x32xf32> to vector<1x2x32xf32>
    tpu.vector_store %arg5[%c7_174, %c0_175, %c0_176], %550 {strides = array<i32>} : memref<8x2x64xf32, #tpu.memory_space<vmem>>, vector<1x2x32xf32>,
    %c0_177 = arith.constant 0 : index
    %c0_178 = arith.constant 0 : index
    %c32_179 = arith.constant 32 : index
    %551 = vector.load %arg5[%c0_177, %c0_178, %c32_179] : memref<8x2x64xf32, #tpu.memory_space<vmem>>, vector<1x2x32xf32>
    %552 = vector.shape_cast %551 : vector<1x2x32xf32> to vector<2x32xf32>
    %553 = vector.shape_cast %547 : vector<2x32xf32> to vector<1x2x32xf32>
    tpu.vector_store %arg5[%c0_177, %c0_178, %c32_179], %553 {strides = array<i32>} : memref<8x2x64xf32, #tpu.memory_space<vmem>>, vector<1x2x32xf32>,
    %c0_180 = arith.constant 0 : index
    %c0_181 = arith.constant 0 : index
    %c0_182 = arith.constant 0 : index
    %554 = vector.load %arg3[%c0_180, %c0_181, %c0_182] : memref<2x32x32xf32, #tpu.memory_space<vmem>>, vector<1x32x32xf32>
    %555 = vector.shape_cast %554 : vector<1x32x32xf32> to vector<32x32xf32>
    %cst_183 = arith.constant dense<0.000000e+00> : vector<2x32xf32>
    %556 = tpu.matmul %516, %555, %cst_183 {dimension_numbers = #tpu.dot_dimension_numbers<[1], [0], [0], [1], [0, 0, 1, 1], [], []>} : vector<2x32xf32>, vector<32x32xf32>, vector<2x32xf32> -> vector<2x32xf32>
    %c1_184 = arith.constant 1 : index
    %c0_185 = arith.constant 0 : index
    %c0_186 = arith.constant 0 : index
    %557 = vector.load %arg3[%c1_184, %c0_185, %c0_186] : memref<2x32x32xf32, #tpu.memory_space<vmem>>, vector<1x32x32xf32>
    %558 = vector.shape_cast %557 : vector<1x32x32xf32> to vector<32x32xf32>
    %cst_187 = arith.constant dense<0.000000e+00> : vector<2x32xf32>
    %559 = tpu.matmul %547, %558, %cst_187 {dimension_numbers = #tpu.dot_dimension_numbers<[1], [0], [0], [1], [0, 0, 1, 1], [], []>} : vector<2x32xf32>, vector<32x32xf32>, vector<2x32xf32> -> vector<2x32xf32>
    %560 = arith.addf %556, %559 : vector<2x32xf32>
    %c0_188 = arith.constant 0 : index
    %c0_189 = arith.constant 0 : index
    %561 = vector.load %arg4[%c0_188, %c0_189] : memref<1x32xf32, #tpu.memory_space<vmem>>, vector<1x32xf32>
    %562 = vector.broadcast %561 : vector<1x32xf32> to vector<2x32xf32>
    %563 = arith.addf %560, %562 : vector<2x32xf32>
    %564 = math.tanh %563 : vector<2x32xf32>
    %c0_190 = arith.constant 0 : index
    %c0_191 = arith.constant 0 : index
    %565 = vector.load %arg6[%c0_190, %c0_191] : memref<2x32xf32, #tpu.memory_space<vmem>>, vector<2x32xf32>
    tpu.vector_store %arg6[%c0_190, %c0_191], %564 {strides = array<i32>} : memref<2x32xf32, #tpu.memory_space<vmem>>, vector<2x32xf32>,
    return
  }
}

</mosaic_0001>

<bundles_post_ra>
// kernel: encoder_forward.1
= control target key start
LH: loop header
LB: loop body
LE: loop exit
PB: predicated region body
PF: predicated region fallthrough
CT: control target
= control target key end

     0   :  { %12 = vsyncpa [#allocation3], 0  ;;  %v2438_v2 = vmov 0.0   ;;  %s2964_s0 = inlined_call_operand.vmem [shape: f32[2,8,2,96], index: 0, kind: input, shape index: {}]   ;;  %s2965_s1 = inlined_call_operand.vmem [shape: f32[2,32,96], index: 1, kind: input, shape index: {}]   ;;  %s2966_s2 = inlined_call_operand.vmem [shape: f32[2,1,32], index: 2, kind: input, shape index: {}]   ;;  %s2967_s3 = inlined_call_operand.vmem [shape: f32[2,32,32], index: 3, kind: input, shape index: {}]   ;;  %s2968_s4 = inlined_call_operand.vmem [shape: f32[1,32], index: 4, kind: input, shape index: {}]   ;;  %s2969_s5 = inlined_call_operand.hbm [shape: f32[8,2,64], index: 5, kind: output, shape index: {0}]   ;;  %s2970_s6 = inlined_call_operand.hbm [shape: f32[2,32], index: 6, kind: output, shape index: {1}]  }
   0x1   :  { %v2484_v0 = vld [vmem:[%s2965_s1 + $0x18] sm:$0xff]  ;;  %2090 = vmatprep.subr.mxu0 %v2438_v2  ;;  %2101 = vmatprep.subr.mxu1 %v2438_v2  ;;  %v2496_v3 = vld [vmem:[%s2965_s1 + $0x10] sm:$0xff]  ;;  %v2510_v5 = vld [vmem:[%s2965_s1 + $0x8] sm:$0xff] }
   0x2   :  { %v2489_v1 = vld [vmem:[%s2965_s1 + $0x38] sm:$0xff]  ;;  %v2501_v4 = vld [vmem:[%s2965_s1 + $0x30] sm:$0xff]  ;;  %2091 = vmatpush3.msra.mxu0 %v2484_v0 }
   0x3   :  { %2102 = vmatpush3.msra.mxu1 %v2489_v1  ;;  %2092 = vmatprep.subr.mxu0 %v2438_v2 }
   0x4   :  { %2103 = vmatprep.subr.mxu1 %v2438_v2 }
   0x5   :  { %13 = vsyncpa [#allocation5], 0  ;;  %2093 = vmatpush3.msra.mxu0 %v2496_v3  ;;  %2104 = vmatpush3.msra.mxu1 %v2501_v4  ;;  %v2517_v6 = vld [vmem:[%s2965_s1 + $0x28] sm:$0xff]  ;;  %v2524_v7 = vld [vmem:[%s2965_s1] sm:$0xff]  ;;  %vm2439_vm0 = vmmov 0   ;;  %s2441_s20 = smov 96  }
   0x6   :  { %2094 = vmatprep.subr.mxu0 %v2438_v2  ;;  %2105 = vmatprep.subr.mxu1 %v2438_v2  ;;  %v2532_v8 = vld [vmem:[%s2965_s1 + $0x20] sm:$0xff]  ;;  %s2440_s1 = smov 64   ;;  %v1948_v21 = vld [vmem:[%s2964_s0 + $0x1e] sm:$0x3]  ;;  %vm260_vm1 = vcmask 517376   ;;  %vm257_vm2 = vcmask 254976  }
   0x7   :  { %2095 = vmatpush3.msra.mxu0 %v2510_v5  ;;  %2098 = vmatprep.mubr.msk.f32.mxu0 %vm2439_vm0, %v2438_v2  ;;  %v1947_v9 = vld [vmem:[%s2966_s2] ss:$0 sm:$0xff]  ;;  %v1950_v10 = vld [vmem:[%s2966_s2 + $0x1] ss:$0 sm:$0xff]  ;;  %vm37_vm3 = vcmask 261120  }
   0x8   :  { %2096 = vmatprep.subr.mxu0 %v2438_v2  ;;  %2106 = vmatpush3.msra.mxu1 %v2517_v6  ;;  %v36_v19 = vld [vmem:[%s2964_s0] sm:$0x3]  ;;  %v1951_v59 = vld [vmem:[%s2964_s0 + $0x2] sm:$0x3]  ;;  %v1954_v61 = vld [vmem:[%s2964_s0 + $0x1c] sm:$0x3] }
   0x9   :  { %2097 = vmatpush3.msra.mxu0 %v2524_v7  ;;  %2107 = vmatprep.subr.mxu1 %v2438_v2 }
   0xa   :  { %2099 = vmatmul.mubr.f32.vlgmr.msra.gmra.mxu0 %v2438_v2  ;;  %2108 = vmatpush3.msra.mxu1 %v2532_v8 }
   0xb   :  { %2109 = vmatprep.mubr.msk.f32.mxu1 %vm2439_vm0, %v2438_v2  ;;  %123 = vrot.lane.b32.xlu0 %v1947_v9, %s2440_s1 }
   0xc   :  { %2110 = vmatmul.mubr.f32.vlgmr.msra.gmra.mxu1 %v2438_v2  ;;  %2112 = vmatprep.subr.mxu0 %v2438_v2 }
   0xd   :  { %2113 = vmatpush3.msra.mxu0 %v2484_v0  ;;  %2123 = vmatprep.subr.mxu1 %v2438_v2 }
   0xe   :  { %2114 = vmatprep.subr.mxu0 %v2438_v2  ;;  %2124 = vmatpush3.msra.mxu1 %v2489_v1 }
   0xf   :  { %230 = vrot.lane.b32.xlu0 %v1950_v10, %s2440_s1  ;;  %2115 = vmatpush3.msra.mxu0 %v2496_v3 }
  0x10   :  { %2116 = vmatprep.subr.mxu0 %v2438_v2  ;;  %2125 = vmatprep.subr.mxu1 %v2438_v2 }
  0x11   :  { %2117 = vmatpush3.msra.mxu0 %v2510_v5  ;;  %2120 = vmatprep.mubr.msk.f32.mxu0 %vm2439_vm0, %v2438_v2 }
  0x12   :  { %2118 = vmatprep.subr.mxu0 %v2438_v2  ;;  %2126 = vmatpush3.msra.mxu1 %v2501_v4 }
  0x13   :  { %2119 = vmatpush3.msra.mxu0 %v2524_v7  ;;  %2127 = vmatprep.subr.mxu1 %v2438_v2 }
  0x14   :  { %2128 = vmatpush3.msra.mxu1 %v2517_v6  ;;  %2131 = vmatprep.mubr.msk.f32.mxu1 %vm2439_vm0, %v2438_v2 }
  0x15   :  { %2129 = vmatprep.subr.mxu1 %v2438_v2  ;;  %2134 = vmatprep.subr.mxu0 %v2438_v2 }
  0x16   :  { %2130 = vmatpush3.msra.mxu1 %v2532_v8 }
  0x17   :  { %2145 = vmatprep.subr.mxu1 %v2438_v2 }
  0x7d   :  { %v2573_v11 = vpop.permute.xlu0 %123 }
  0x81   :  { %v2575_v13 = vpop.permute.xlu0 %230 }
  0xca   :  { %v107_v12 = vpop.f32.mrf.mxu0 }
  0xcb   :  { %v126_v14 = vadd.f32 %v2573_v11, %v107_v12  ;;  %v111_v20 = vadd.f32 %v107_v12, %v36_v19 }
  0xcc   :  { %v2100_v15 = vpop.f32.mrf.mxu0  ;;  %v214_v16 = vpop.f32.mrf.mxu1 }
  0xcd   :  { %128 = vrot.lane.b32.xlu1 %v126_v14, %s2440_s1  ;;  %v233_v17 = vadd.f32 %v2575_v13, %v214_v16  ;;  %v1946_v22 = vmul.f32 -1.442695, %v111_v20  ;;  %v218_v23 = vadd.f32 %v1948_v21, %v214_v16 }
  0xce   :  { %v2111_v18 = vpop.f32.mrf.mxu1 }
  0xcf   :  { %2296 = vpow2.f32 %v1946_v22  ;;  %v1949_v24 = vmul.f32 -1.442695, %v218_v23 }
  0xd1   :  { %235 = vrot.lane.b32.xlu1 %v233_v17, %s2440_s1  ;;  %2298 = vpow2.f32 %v1949_v24 }
  0xdc   :  { %v2297_v25 = vpop.eup %2296 }
  0xdd   :  { %v115_v26 = vadd.f32 1.0, %v2297_v25 }
  0xde   :  { %v2299_v27 = vpop.eup %2298 }
  0xdf   :  { %2300 = vrcp.f32 %v115_v26  ;;  %v222_v28 = vadd.f32 1.0, %v2299_v27 }
  0xe1   :  { %2302 = vrcp.f32 %v222_v28 }
  0xec   :  { %v2301_v29 = vpop.eup %2300 }
  0xed   :  { %v138_v41 = vsub.f32 1.0, %v2301_v29  ;;  %v144_v43 = vmul.f32 0.0, %v2301_v29 }
  0xee   :  { %v2303_v32 = vpop.eup %2302 }
  0xef   :  { %v245_v46 = vsub.f32 1.0, %v2303_v32  ;;  %v251_v48 = vmul.f32 0.0, %v2303_v32 }
 0x13f   :  { %v129_v30 = vpop.permute.xlu1 %128 }
 0x140   :  { %v131_v31 = vmul.f32 %v2301_v29, %v129_v30 }
 0x142   :  { %133 = vrot.lane.b32.xlu0 %v131_v31, %s2440_s1 }
 0x143   :  { %v236_v33 = vpop.permute.xlu1 %235 }
 0x144   :  { %v238_v34 = vmul.f32 %v2303_v32, %v236_v33 }
 0x146   :  { %240 = vrot.lane.b32.xlu1 %v238_v34, %s2440_s1 }
 0x1b4   :  { %v134_v35 = vpop.permute.xlu0 %133 }
 0x1b5   :  { %v136_v36 = vadd.f32 %v134_v35, %v36_v19 }
 0x1b7   :  { %2304 = vtanh.f32 %v136_v36 }
 0x1b8   :  { %v241_v37 = vpop.permute.xlu1 %240 }
 0x1b9   :  { %v243_v38 = vadd.f32 %v1948_v21, %v241_v37 }
 0x1bb   :  { %2306 = vtanh.f32 %v243_v38 }
 0x1c4   :  { %v2305_v39 = vpop.eup %2304 }
 0x1c5   :  { %140 = vrot.lane.b32.xlu0 %v2305_v39, %s2441_s20 }
 0x1c8   :  { %v2307_v40 = vpop.eup %2306 }
 0x1c9   :  { %247 = vrot.lane.b32.xlu1 %v2307_v40, %s2441_s20 }
 0x237   :  { %v141_v42 = vpop.permute.xlu0 %140 }
 0x238   :  { %v143_v44 = vmul.f32 %v141_v42, %v138_v41 }
 0x23a   :  { %v2591_v45 = vadd.f32 %v144_v43, %v143_v44 }
 0x23b   :  { %v248_v47 = vpop.permute.xlu1 %247 }
 0x23c   :  { %v250_v49 = vmul.f32 %v248_v47, %v245_v46  ;;  %254 = vrot.lane.b32.xlu0 %v2591_v45, %s2441_s20  ;;  %v1957_v46 = vld [vmem:[%s2964_s0 + $0x4] sm:$0x3] }
 0x23e   :  { %v2595_v50 = vadd.f32 %v251_v48, %v250_v49  ;;  %v1960_v48 = vld [vmem:[%s2964_s0 + $0x1a] sm:$0x3] }
 0x240   :  { %366 = vrot.lane.b32.xlu1 %v2595_v50, %s2441_s20  ;;  %261 = vst.msk [vmem:[#allocation2 + $0xe] sm:$0x3] %vm260_vm1, %v2595_v50 }
 0x2ae   :  { %v255_v51 = vpop.permute.xlu0 %254 }
 0x2af   :  { %258 = vst.msk [vmem:[#allocation2] sm:$0x3] %vm257_vm2, %v255_v51  ;;  %2121 = vmatmul.mubr.msk.f32.vlgmr.msra.gmra.mxu0 %vm37_vm3, %v255_v51 }
 0x2b0   :  { %2135 = vmatpush3.msra.mxu0 %v2484_v0  ;;  %2142 = vmatprep.mubr.msk.f32.mxu0 %vm2439_vm0, %v2438_v2 }
 0x2b1   :  { %2136 = vmatprep.subr.mxu0 %v2438_v2 }
 0x2b2   :  { %v367_v52 = vpop.permute.xlu1 %366  ;;  %2137 = vmatpush3.msra.mxu0 %v2496_v3 }
 0x2b3   :  { %2132 = vmatmul.mubr.msk.f32.vlgmr.msra.gmra.mxu1 %vm37_vm3, %v367_v52  ;;  %2138 = vmatprep.subr.mxu0 %v2438_v2 }
 0x2b4   :  { %2139 = vmatpush3.msra.mxu0 %v2510_v5  ;;  %2146 = vmatpush3.msra.mxu1 %v2489_v1 }
 0x2b5   :  { %2140 = vmatprep.subr.mxu0 %v2438_v2  ;;  %2147 = vmatprep.subr.mxu1 %v2438_v2 }
 0x2b6   :  { %2141 = vmatpush3.msra.mxu0 %v2524_v7  ;;  %2148 = vmatpush3.msra.mxu1 %v2501_v4 }
 0x2b7   :  { %2149 = vmatprep.subr.mxu1 %v2438_v2  ;;  %2153 = vmatprep.mubr.msk.f32.mxu1 %vm2439_vm0, %v2438_v2 }
 0x2b8   :  { %2150 = vmatpush3.msra.mxu1 %v2517_v6  ;;  %2156 = vmatprep.subr.mxu0 %v2438_v2 }
 0x2b9   :  { %2151 = vmatprep.subr.mxu1 %v2438_v2 }
 0x2ba   :  { %2152 = vmatpush3.msra.mxu1 %v2532_v8 }
 0x2bb   :  { %2167 = vmatprep.subr.mxu1 %v2438_v2 }
 0x36f   :  { %v332_v53 = vpop.f32.mrf.mxu0 }
 0x370   :  { %v343_v54 = vadd.f32 %v332_v53, %v2573_v11  ;;  %v336_v60 = vadd.f32 %v1951_v59, %v332_v53 }
 0x371   :  { %v2122_v55 = vpop.f32.mrf.mxu0 }
 0x372   :  { %345 = vrot.lane.b32.xlu0 %v343_v54, %s2440_s1  ;;  %v1953_v62 = vmul.f32 -1.442695, %v336_v60 }
 0x373   :  { %v436_v56 = vpop.f32.mrf.mxu1 }
 0x374   :  { %v447_v57 = vadd.f32 %v436_v56, %v2575_v13  ;;  %v440_v63 = vadd.f32 %v1954_v61, %v436_v56  ;;  %2308 = vpow2.f32 %v1953_v62 }
 0x375   :  { %v2133_v58 = vpop.f32.mrf.mxu1 }
 0x376   :  { %449 = vrot.lane.b32.xlu1 %v447_v57, %s2440_s1  ;;  %v1956_v9 = vmul.f32 -1.442695, %v440_v63 }
 0x378   :  { %2310 = vpow2.f32 %v1956_v9 }
 0x381   :  { %v2309_v10 = vpop.eup %2308 }
 0x382   :  { %v340_v12 = vadd.f32 1.0, %v2309_v10 }
 0x384   :  { %2312 = vrcp.f32 %v340_v12 }
 0x385   :  { %v2311_v14 = vpop.eup %2310 }
 0x386   :  { %v444_v15 = vadd.f32 1.0, %v2311_v14 }
 0x388   :  { %2314 = vrcp.f32 %v444_v15 }
 0x391   :  { %v2313_v16 = vpop.eup %2312 }
 0x392   :  { %v355_v28 = vsub.f32 1.0, %v2313_v16  ;;  %v361_v30 = vmul.f32 %v2313_v16, %v2591_v45 }
 0x395   :  { %v2315_v19 = vpop.eup %2314 }
 0x396   :  { %v459_v33 = vsub.f32 1.0, %v2315_v19  ;;  %v465_v35 = vmul.f32 %v2315_v19, %v2595_v50 }
 0x3e4   :  { %v346_v17 = vpop.permute.xlu0 %345 }
 0x3e5   :  { %v348_v18 = vmul.f32 %v2313_v16, %v346_v17 }
 0x3e7   :  { %350 = vrot.lane.b32.xlu0 %v348_v18, %s2440_s1 }
 0x3e8   :  { %v450_v20 = vpop.permute.xlu1 %449 }
 0x3e9   :  { %v452_v21 = vmul.f32 %v2315_v19, %v450_v20 }
 0x3eb   :  { %454 = vrot.lane.b32.xlu1 %v452_v21, %s2440_s1 }
 0x459   :  { %v351_v22 = vpop.permute.xlu0 %350 }
 0x45a   :  { %v353_v23 = vadd.f32 %v1951_v59, %v351_v22 }
 0x45c   :  { %2316 = vtanh.f32 %v353_v23 }
 0x45d   :  { %v455_v24 = vpop.permute.xlu1 %454 }
 0x45e   :  { %v457_v25 = vadd.f32 %v1954_v61, %v455_v24 }
 0x460   :  { %2318 = vtanh.f32 %v457_v25 }
 0x469   :  { %v2317_v26 = vpop.eup %2316 }
 0x46a   :  { %357 = vrot.lane.b32.xlu0 %v2317_v26, %s2441_s20 }
 0x46d   :  { %v2319_v27 = vpop.eup %2318 }
 0x46e   :  { %461 = vrot.lane.b32.xlu1 %v2319_v27, %s2441_s20 }
 0x4dc   :  { %v358_v29 = vpop.permute.xlu0 %357 }
 0x4dd   :  { %v360_v31 = vmul.f32 %v358_v29, %v355_v28 }
 0x4df   :  { %v2639_v32 = vadd.f32 %v361_v30, %v360_v31 }
 0x4e0   :  { %v462_v34 = vpop.permute.xlu1 %461 }
 0x4e1   :  { %v464_v36 = vmul.f32 %v462_v34, %v459_v33  ;;  %468 = vrot.lane.b32.xlu0 %v2639_v32, %s2441_s20  ;;  %v1963_v33 = vld [vmem:[%s2964_s0 + $0x6] sm:$0x3] }
 0x4e3   :  { %v2644_v37 = vadd.f32 %v465_v35, %v464_v36  ;;  %v1966_v35 = vld [vmem:[%s2964_s0 + $0x18] sm:$0x3] }
 0x4e5   :  { %579 = vrot.lane.b32.xlu1 %v2644_v37, %s2441_s20  ;;  %474 = vst.msk [vmem:[#allocation2 + $0xc] sm:$0x3] %vm260_vm1, %v2644_v37 }
 0x553   :  { %v469_v38 = vpop.permute.xlu0 %468 }
 0x554   :  { %472 = vst.msk [vmem:[#allocation2 + $0x2] sm:$0x3] %vm257_vm2, %v469_v38  ;;  %2143 = vmatmul.mubr.msk.f32.vlgmr.msra.gmra.mxu0 %vm37_vm3, %v469_v38 }
 0x555   :  { %2157 = vmatpush3.msra.mxu0 %v2484_v0  ;;  %2164 = vmatprep.mubr.msk.f32.mxu0 %vm2439_vm0, %v2438_v2 }
 0x556   :  { %2158 = vmatprep.subr.mxu0 %v2438_v2 }
 0x557   :  { %v580_v39 = vpop.permute.xlu1 %579  ;;  %2159 = vmatpush3.msra.mxu0 %v2496_v3 }
 0x558   :  { %2154 = vmatmul.mubr.msk.f32.vlgmr.msra.gmra.mxu1 %vm37_vm3, %v580_v39  ;;  %2160 = vmatprep.subr.mxu0 %v2438_v2 }
 0x559   :  { %2161 = vmatpush3.msra.mxu0 %v2510_v5  ;;  %2168 = vmatpush3.msra.mxu1 %v2489_v1 }
 0x55a   :  { %2162 = vmatprep.subr.mxu0 %v2438_v2  ;;  %2169 = vmatprep.subr.mxu1 %v2438_v2 }
 0x55b   :  { %2163 = vmatpush3.msra.mxu0 %v2524_v7  ;;  %2170 = vmatpush3.msra.mxu1 %v2501_v4 }
 0x55c   :  { %2171 = vmatprep.subr.mxu1 %v2438_v2  ;;  %2175 = vmatprep.mubr.msk.f32.mxu1 %vm2439_vm0, %v2438_v2 }
 0x55d   :  { %2172 = vmatpush3.msra.mxu1 %v2517_v6  ;;  %2178 = vmatprep.subr.mxu0 %v2438_v2 }
 0x55e   :  { %2173 = vmatprep.subr.mxu1 %v2438_v2 }
 0x55f   :  { %2174 = vmatpush3.msra.mxu1 %v2532_v8 }
 0x560   :  { %2189 = vmatprep.subr.mxu1 %v2438_v2 }
 0x614   :  { %v545_v40 = vpop.f32.mrf.mxu0 }
 0x615   :  { %v556_v41 = vadd.f32 %v545_v40, %v2573_v11  ;;  %v549_v47 = vadd.f32 %v1957_v46, %v545_v40 }
 0x616   :  { %v2144_v42 = vpop.f32.mrf.mxu0 }
 0x617   :  { %558 = vrot.lane.b32.xlu0 %v556_v41, %s2440_s1  ;;  %v1959_v49 = vmul.f32 -1.442695, %v549_v47 }
 0x618   :  { %v649_v43 = vpop.f32.mrf.mxu1 }
 0x619   :  { %v660_v44 = vadd.f32 %v649_v43, %v2575_v13  ;;  %v653_v50 = vadd.f32 %v1960_v48, %v649_v43  ;;  %2320 = vpow2.f32 %v1959_v49 }
 0x61a   :  { %v2155_v45 = vpop.f32.mrf.mxu1 }
 0x61b   :  { %662 = vrot.lane.b32.xlu1 %v660_v44, %s2440_s1  ;;  %v1962_v51 = vmul.f32 -1.442695, %v653_v50 }
 0x61d   :  { %2322 = vpow2.f32 %v1962_v51 }
 0x626   :  { %v2321_v52 = vpop.eup %2320 }
 0x627   :  { %v553_v53 = vadd.f32 1.0, %v2321_v52 }
 0x629   :  { %2324 = vrcp.f32 %v553_v53 }
 0x62a   :  { %v2323_v54 = vpop.eup %2322 }
 0x62b   :  { %v657_v55 = vadd.f32 1.0, %v2323_v54 }
 0x62d   :  { %2326 = vrcp.f32 %v657_v55 }
 0x636   :  { %v2325_v56 = vpop.eup %2324 }
 0x637   :  { %v568_v15 = vsub.f32 1.0, %v2325_v56  ;;  %v574_v17 = vmul.f32 %v2325_v56, %v2639_v32 }
 0x63a   :  { %v2327_v59 = vpop.eup %2326 }
 0x63b   :  { %v672_v20 = vsub.f32 1.0, %v2327_v59  ;;  %v678_v22 = vmul.f32 %v2327_v59, %v2644_v37 }
 0x689   :  { %v559_v57 = vpop.permute.xlu0 %558 }
 0x68a   :  { %v561_v58 = vmul.f32 %v2325_v56, %v559_v57 }
 0x68c   :  { %563 = vrot.lane.b32.xlu0 %v561_v58, %s2440_s1 }
 0x68d   :  { %v663_v60 = vpop.permute.xlu1 %662 }
 0x68e   :  { %v665_v61 = vmul.f32 %v2327_v59, %v663_v60 }
 0x690   :  { %667 = vrot.lane.b32.xlu1 %v665_v61, %s2440_s1 }
 0x6fe   :  { %v564_v62 = vpop.permute.xlu0 %563 }
 0x6ff   :  { %v566_v63 = vadd.f32 %v1957_v46, %v564_v62 }
 0x701   :  { %2328 = vtanh.f32 %v566_v63 }
 0x702   :  { %v668_v9 = vpop.permute.xlu1 %667 }
 0x703   :  { %v670_v10 = vadd.f32 %v1960_v48, %v668_v9 }
 0x705   :  { %2330 = vtanh.f32 %v670_v10 }
 0x70e   :  { %v2329_v12 = vpop.eup %2328 }
 0x70f   :  { %570 = vrot.lane.b32.xlu0 %v2329_v12, %s2441_s20 }
 0x712   :  { %v2331_v14 = vpop.eup %2330 }
 0x713   :  { %674 = vrot.lane.b32.xlu1 %v2331_v14, %s2441_s20 }
 0x781   :  { %v571_v16 = vpop.permute.xlu0 %570 }
 0x782   :  { %v573_v18 = vmul.f32 %v571_v16, %v568_v15 }
 0x784   :  { %v2688_v19 = vadd.f32 %v574_v17, %v573_v18 }
 0x785   :  { %v675_v21 = vpop.permute.xlu1 %674 }
 0x786   :  { %v677_v23 = vmul.f32 %v675_v21, %v672_v20  ;;  %681 = vrot.lane.b32.xlu0 %v2688_v19, %s2441_s20  ;;  %v1969_v20 = vld [vmem:[%s2964_s0 + $0x8] sm:$0x3] }
 0x788   :  { %v2693_v24 = vadd.f32 %v678_v22, %v677_v23  ;;  %v1972_v22 = vld [vmem:[%s2964_s0 + $0x16] sm:$0x3] }
 0x78a   :  { %792 = vrot.lane.b32.xlu1 %v2693_v24, %s2441_s20  ;;  %687 = vst.msk [vmem:[#allocation2 + $0xa] sm:$0x3] %vm260_vm1, %v2693_v24 }
 0x7f8   :  { %v682_v25 = vpop.permute.xlu0 %681 }
 0x7f9   :  { %685 = vst.msk [vmem:[#allocation2 + $0x4] sm:$0x3] %vm257_vm2, %v682_v25  ;;  %2165 = vmatmul.mubr.msk.f32.vlgmr.msra.gmra.mxu0 %vm37_vm3, %v682_v25 }
 0x7fa   :  { %2179 = vmatpush3.msra.mxu0 %v2484_v0  ;;  %2186 = vmatprep.mubr.msk.f32.mxu0 %vm2439_vm0, %v2438_v2 }
 0x7fb   :  { %2180 = vmatprep.subr.mxu0 %v2438_v2 }
 0x7fc   :  { %v793_v26 = vpop.permute.xlu1 %792  ;;  %2181 = vmatpush3.msra.mxu0 %v2496_v3 }
 0x7fd   :  { %2176 = vmatmul.mubr.msk.f32.vlgmr.msra.gmra.mxu1 %vm37_vm3, %v793_v26  ;;  %2182 = vmatprep.subr.mxu0 %v2438_v2 }
 0x7fe   :  { %2183 = vmatpush3.msra.mxu0 %v2510_v5  ;;  %2190 = vmatpush3.msra.mxu1 %v2489_v1 }
 0x7ff   :  { %2184 = vmatprep.subr.mxu0 %v2438_v2  ;;  %2191 = vmatprep.subr.mxu1 %v2438_v2 }
 0x800   :  { %2185 = vmatpush3.msra.mxu0 %v2524_v7  ;;  %2192 = vmatpush3.msra.mxu1 %v2501_v4 }
 0x801   :  { %2193 = vmatprep.subr.mxu1 %v2438_v2  ;;  %2197 = vmatprep.mubr.msk.f32.mxu1 %vm2439_vm0, %v2438_v2 }
 0x802   :  { %2194 = vmatpush3.msra.mxu1 %v2517_v6  ;;  %2200 = vmatprep.subr.mxu0 %v2438_v2 }
 0x803   :  { %2195 = vmatprep.subr.mxu1 %v2438_v2 }
 0x804   :  { %2196 = vmatpush3.msra.mxu1 %v2532_v8 }
 0x805   :  { %2211 = vmatprep.subr.mxu1 %v2438_v2 }
 0x8b9   :  { %v758_v27 = vpop.f32.mrf.mxu0 }
 0x8ba   :  { %v769_v28 = vadd.f32 %v758_v27, %v2573_v11  ;;  %v762_v34 = vadd.f32 %v1963_v33, %v758_v27 }
 0x8bb   :  { %v2166_v29 = vpop.f32.mrf.mxu0 }
 0x8bc   :  { %771 = vrot.lane.b32.xlu0 %v769_v28, %s2440_s1  ;;  %v1965_v36 = vmul.f32 -1.442695, %v762_v34 }
 0x8bd   :  { %v862_v30 = vpop.f32.mrf.mxu1 }
 0x8be   :  { %v873_v31 = vadd.f32 %v862_v30, %v2575_v13  ;;  %v866_v37 = vadd.f32 %v1966_v35, %v862_v30  ;;  %2332 = vpow2.f32 %v1965_v36 }
 0x8bf   :  { %v2177_v32 = vpop.f32.mrf.mxu1 }
 0x8c0   :  { %875 = vrot.lane.b32.xlu1 %v873_v31, %s2440_s1  ;;  %v1968_v38 = vmul.f32 -1.442695, %v866_v37 }
 0x8c2   :  { %2334 = vpow2.f32 %v1968_v38 }
 0x8cb   :  { %v2333_v39 = vpop.eup %2332 }
 0x8cc   :  { %v766_v40 = vadd.f32 1.0, %v2333_v39 }
 0x8ce   :  { %2336 = vrcp.f32 %v766_v40 }
 0x8cf   :  { %v2335_v41 = vpop.eup %2334 }
 0x8d0   :  { %v870_v42 = vadd.f32 1.0, %v2335_v41 }
 0x8d2   :  { %2338 = vrcp.f32 %v870_v42 }
 0x8db   :  { %v2337_v43 = vpop.eup %2336 }
 0x8dc   :  { %v781_v55 = vsub.f32 1.0, %v2337_v43  ;;  %v787_v57 = vmul.f32 %v2337_v43, %v2688_v19 }
 0x8df   :  { %v2339_v46 = vpop.eup %2338 }
 0x8e0   :  { %v885_v60 = vsub.f32 1.0, %v2339_v46  ;;  %v891_v62 = vmul.f32 %v2339_v46, %v2693_v24 }
 0x92e   :  { %v772_v44 = vpop.permute.xlu0 %771 }
 0x92f   :  { %v774_v45 = vmul.f32 %v2337_v43, %v772_v44 }
 0x931   :  { %776 = vrot.lane.b32.xlu0 %v774_v45, %s2440_s1 }
 0x932   :  { %v876_v47 = vpop.permute.xlu1 %875 }
 0x933   :  { %v878_v48 = vmul.f32 %v2339_v46, %v876_v47 }
 0x935   :  { %880 = vrot.lane.b32.xlu1 %v878_v48, %s2440_s1 }
 0x9a3   :  { %v777_v49 = vpop.permute.xlu0 %776 }
 0x9a4   :  { %v779_v50 = vadd.f32 %v1963_v33, %v777_v49 }
 0x9a6   :  { %2340 = vtanh.f32 %v779_v50 }
 0x9a7   :  { %v881_v51 = vpop.permute.xlu1 %880 }
 0x9a8   :  { %v883_v52 = vadd.f32 %v1966_v35, %v881_v51 }
 0x9aa   :  { %2342 = vtanh.f32 %v883_v52 }
 0x9b3   :  { %v2341_v53 = vpop.eup %2340 }
 0x9b4   :  { %783 = vrot.lane.b32.xlu0 %v2341_v53, %s2441_s20 }
 0x9b7   :  { %v2343_v54 = vpop.eup %2342 }
 0x9b8   :  { %887 = vrot.lane.b32.xlu1 %v2343_v54, %s2441_s20 }
 0xa26   :  { %v784_v56 = vpop.permute.xlu0 %783 }
 0xa27   :  { %v786_v58 = vmul.f32 %v784_v56, %v781_v55 }
 0xa29   :  { %v2737_v59 = vadd.f32 %v787_v57, %v786_v58 }
 0xa2a   :  { %v888_v61 = vpop.permute.xlu1 %887 }
 0xa2b   :  { %v890_v63 = vmul.f32 %v888_v61, %v885_v60  ;;  %894 = vrot.lane.b32.xlu0 %v2737_v59, %s2441_s20  ;;  %v1975_v60 = vld [vmem:[%s2964_s0 + $0xa] sm:$0x3] }
 0xa2d   :  { %v2742_v9 = vadd.f32 %v891_v62, %v890_v63  ;;  %v1978_v62 = vld [vmem:[%s2964_s0 + $0x14] sm:$0x3] }
 0xa2f   :  { %1005 = vrot.lane.b32.xlu1 %v2742_v9, %s2441_s20  ;;  %900 = vst.msk [vmem:[#allocation2 + $0x8] sm:$0x3] %vm260_vm1, %v2742_v9 }
 0xa9d   :  { %v895_v10 = vpop.permute.xlu0 %894 }
 0xa9e   :  { %898 = vst.msk [vmem:[#allocation2 + $0x6] sm:$0x3] %vm257_vm2, %v895_v10  ;;  %2187 = vmatmul.mubr.msk.f32.vlgmr.msra.gmra.mxu0 %vm37_vm3, %v895_v10 }
 0xa9f   :  { %2201 = vmatpush3.msra.mxu0 %v2484_v0  ;;  %2208 = vmatprep.mubr.msk.f32.mxu0 %vm2439_vm0, %v2438_v2 }
 0xaa0   :  { %2202 = vmatprep.subr.mxu0 %v2438_v2 }
 0xaa1   :  { %v1006_v12 = vpop.permute.xlu1 %1005  ;;  %2203 = vmatpush3.msra.mxu0 %v2496_v3 }
 0xaa2   :  { %2198 = vmatmul.mubr.msk.f32.vlgmr.msra.gmra.mxu1 %vm37_vm3, %v1006_v12  ;;  %2204 = vmatprep.subr.mxu0 %v2438_v2 }
 0xaa3   :  { %2205 = vmatpush3.msra.mxu0 %v2510_v5  ;;  %2212 = vmatpush3.msra.mxu1 %v2489_v1 }
 0xaa4   :  { %2206 = vmatprep.subr.mxu0 %v2438_v2  ;;  %2213 = vmatprep.subr.mxu1 %v2438_v2 }
 0xaa5   :  { %2207 = vmatpush3.msra.mxu0 %v2524_v7  ;;  %2214 = vmatpush3.msra.mxu1 %v2501_v4 }
 0xaa6   :  { %2215 = vmatprep.subr.mxu1 %v2438_v2  ;;  %2219 = vmatprep.mubr.msk.f32.mxu1 %vm2439_vm0, %v2438_v2 }
 0xaa7   :  { %2216 = vmatpush3.msra.mxu1 %v2517_v6  ;;  %2222 = vmatprep.subr.mxu0 %v2438_v2 }
 0xaa8   :  { %2217 = vmatprep.subr.mxu1 %v2438_v2 }
 0xaa9   :  { %2218 = vmatpush3.msra.mxu1 %v2532_v8 }
 0xaaa   :  { %2233 = vmatprep.subr.mxu1 %v2438_v2 }
 0xb5e   :  { %v971_v14 = vpop.f32.mrf.mxu0 }
 0xb5f   :  { %v982_v15 = vadd.f32 %v971_v14, %v2573_v11  ;;  %v975_v21 = vadd.f32 %v1969_v20, %v971_v14 }
 0xb60   :  { %v2188_v16 = vpop.f32.mrf.mxu0 }
 0xb61   :  { %984 = vrot.lane.b32.xlu0 %v982_v15, %s2440_s1  ;;  %v1971_v23 = vmul.f32 -1.442695, %v975_v21 }
 0xb62   :  { %v1075_v17 = vpop.f32.mrf.mxu1 }
 0xb63   :  { %v1086_v18 = vadd.f32 %v1075_v17, %v2575_v13  ;;  %v1079_v24 = vadd.f32 %v1972_v22, %v1075_v17  ;;  %2344 = vpow2.f32 %v1971_v23 }
 0xb64   :  { %v2199_v19 = vpop.f32.mrf.mxu1 }
 0xb65   :  { %1088 = vrot.lane.b32.xlu1 %v1086_v18, %s2440_s1  ;;  %v1974_v25 = vmul.f32 -1.442695, %v1079_v24 }
 0xb67   :  { %2346 = vpow2.f32 %v1974_v25 }
 0xb70   :  { %v2345_v26 = vpop.eup %2344 }
 0xb71   :  { %v979_v27 = vadd.f32 1.0, %v2345_v26 }
 0xb73   :  { %2348 = vrcp.f32 %v979_v27 }
 0xb74   :  { %v2347_v28 = vpop.eup %2346 }
 0xb75   :  { %v1083_v29 = vadd.f32 1.0, %v2347_v28 }
 0xb77   :  { %2350 = vrcp.f32 %v1083_v29 }
 0xb80   :  { %v2349_v30 = vpop.eup %2348 }
 0xb81   :  { %v994_v42 = vsub.f32 1.0, %v2349_v30  ;;  %v1000_v44 = vmul.f32 %v2349_v30, %v2737_v59 }
 0xb84   :  { %v2351_v33 = vpop.eup %2350 }
 0xb85   :  { %v1098_v47 = vsub.f32 1.0, %v2351_v33  ;;  %v1104_v49 = vmul.f32 %v2351_v33, %v2742_v9 }
 0xbd3   :  { %v985_v31 = vpop.permute.xlu0 %984 }
 0xbd4   :  { %v987_v32 = vmul.f32 %v2349_v30, %v985_v31 }
 0xbd6   :  { %989 = vrot.lane.b32.xlu0 %v987_v32, %s2440_s1 }
 0xbd7   :  { %v1089_v34 = vpop.permute.xlu1 %1088 }
 0xbd8   :  { %v1091_v35 = vmul.f32 %v2351_v33, %v1089_v34 }
 0xbda   :  { %1093 = vrot.lane.b32.xlu1 %v1091_v35, %s2440_s1 }
 0xc48   :  { %v990_v36 = vpop.permute.xlu0 %989 }
 0xc49   :  { %v992_v37 = vadd.f32 %v1969_v20, %v990_v36 }
 0xc4b   :  { %2352 = vtanh.f32 %v992_v37 }
 0xc4c   :  { %v1094_v38 = vpop.permute.xlu1 %1093 }
 0xc4d   :  { %v1096_v39 = vadd.f32 %v1972_v22, %v1094_v38 }
 0xc4f   :  { %2354 = vtanh.f32 %v1096_v39 }
 0xc58   :  { %v2353_v40 = vpop.eup %2352 }
 0xc59   :  { %996 = vrot.lane.b32.xlu0 %v2353_v40, %s2441_s20 }
 0xc5c   :  { %v2355_v41 = vpop.eup %2354 }
 0xc5d   :  { %1100 = vrot.lane.b32.xlu1 %v2355_v41, %s2441_s20 }
 0xccb   :  { %v997_v43 = vpop.permute.xlu0 %996 }
 0xccc   :  { %v999_v45 = vmul.f32 %v997_v43, %v994_v42 }
 0xcce   :  { %v2786_v46 = vadd.f32 %v1000_v44, %v999_v45 }
 0xccf   :  { %v1101_v48 = vpop.permute.xlu1 %1100 }
 0xcd0   :  { %v1103_v50 = vmul.f32 %v1101_v48, %v1098_v47  ;;  %1107 = vrot.lane.b32.xlu0 %v2786_v46, %s2441_s20 }
 0xcd2   :  { %v2791_v51 = vadd.f32 %v1104_v49, %v1103_v50 }
 0xcd4   :  { %1111 = vst.msk [vmem:[#allocation2 + $0x6] sm:$0x3] %vm260_vm1, %v2791_v51  ;;  %1216 = vrot.lane.b32.xlu1 %v2791_v51, %s2441_s20 }
 0xd42   :  { %v1108_v52 = vpop.permute.xlu0 %1107 }
 0xd43   :  { %1110 = vst.msk [vmem:[#allocation2 + $0x8] sm:$0x3] %vm257_vm2, %v1108_v52  ;;  %2209 = vmatmul.mubr.msk.f32.vlgmr.msra.gmra.mxu0 %vm37_vm3, %v1108_v52 }
 0xd44   :  { %2223 = vmatpush3.msra.mxu0 %v2484_v0  ;;  %2230 = vmatprep.mubr.msk.f32.mxu0 %vm2439_vm0, %v2438_v2 }
 0xd45   :  { %2224 = vmatprep.subr.mxu0 %v2438_v2 }
 0xd46   :  { %v1217_v53 = vpop.permute.xlu1 %1216  ;;  %2225 = vmatpush3.msra.mxu0 %v2496_v3 }
 0xd47   :  { %2220 = vmatmul.mubr.msk.f32.vlgmr.msra.gmra.mxu1 %vm37_vm3, %v1217_v53  ;;  %2226 = vmatprep.subr.mxu0 %v2438_v2 }
 0xd48   :  { %2227 = vmatpush3.msra.mxu0 %v2510_v5  ;;  %2234 = vmatpush3.msra.mxu1 %v2489_v1 }
 0xd49   :  { %2228 = vmatprep.subr.mxu0 %v2438_v2  ;;  %2235 = vmatprep.subr.mxu1 %v2438_v2 }
 0xd4a   :  { %2229 = vmatpush3.msra.mxu0 %v2524_v7  ;;  %2236 = vmatpush3.msra.mxu1 %v2501_v4 }
 0xd4b   :  { %2237 = vmatprep.subr.mxu1 %v2438_v2  ;;  %2241 = vmatprep.mubr.msk.f32.mxu1 %vm2439_vm0, %v2438_v2 }
 0xd4c   :  { %2238 = vmatpush3.msra.mxu1 %v2517_v6  ;;  %2244 = vmatprep.subr.mxu0 %v2438_v2 }
 0xd4d   :  { %2239 = vmatprep.subr.mxu1 %v2438_v2 }
 0xd4e   :  { %2240 = vmatpush3.msra.mxu1 %v2532_v8 }
 0xd4f   :  { %2255 = vmatprep.subr.mxu1 %v2438_v2 }
 0xe03   :  { %v1182_v54 = vpop.f32.mrf.mxu0 }
 0xe04   :  { %v1193_v55 = vadd.f32 %v1182_v54, %v2573_v11  ;;  %v1186_v61 = vadd.f32 %v1975_v60, %v1182_v54 }
 0xe05   :  { %v2210_v56 = vpop.f32.mrf.mxu0 }
 0xe06   :  { %1195 = vrot.lane.b32.xlu0 %v1193_v55, %s2440_s1  ;;  %v1977_v63 = vmul.f32 -1.442695, %v1186_v61 }
 0xe07   :  { %v1286_v57 = vpop.f32.mrf.mxu1 }
 0xe08   :  { %v1297_v58 = vadd.f32 %v1286_v57, %v2575_v13  ;;  %v1290_v9 = vadd.f32 %v1978_v62, %v1286_v57  ;;  %2356 = vpow2.f32 %v1977_v63 }
 0xe09   :  { %v2221_v59 = vpop.f32.mrf.mxu1 }
 0xe0a   :  { %1299 = vrot.lane.b32.xlu1 %v1297_v58, %s2440_s1  ;;  %v1980_v10 = vmul.f32 -1.442695, %v1290_v9 }
 0xe0c   :  { %2358 = vpow2.f32 %v1980_v10 }
 0xe15   :  { %v2357_v12 = vpop.eup %2356 }
 0xe16   :  { %v1190_v14 = vadd.f32 1.0, %v2357_v12 }
 0xe18   :  { %2360 = vrcp.f32 %v1190_v14 }
 0xe19   :  { %v2359_v15 = vpop.eup %2358 }
 0xe1a   :  { %v1294_v16 = vadd.f32 1.0, %v2359_v15 }
 0xe1c   :  { %2362 = vrcp.f32 %v1294_v16 }
 0xe25   :  { %v2361_v17 = vpop.eup %2360 }
 0xe26   :  { %v1205_v29 = vsub.f32 1.0, %v2361_v17  ;;  %v1211_v31 = vmul.f32 %v2361_v17, %v2786_v46 }
 0xe29   :  { %v2363_v20 = vpop.eup %2362 }
 0xe2a   :  { %v1309_v34 = vsub.f32 1.0, %v2363_v20  ;;  %v1315_v36 = vmul.f32 %v2363_v20, %v2791_v51 }
 0xe78   :  { %v1196_v18 = vpop.permute.xlu0 %1195 }
 0xe79   :  { %v1198_v19 = vmul.f32 %v2361_v17, %v1196_v18 }
 0xe7b   :  { %1200 = vrot.lane.b32.xlu0 %v1198_v19, %s2440_s1 }
 0xe7c   :  { %v1300_v21 = vpop.permute.xlu1 %1299 }
 0xe7d   :  { %v1302_v22 = vmul.f32 %v2363_v20, %v1300_v21 }
 0xe7f   :  { %1304 = vrot.lane.b32.xlu1 %v1302_v22, %s2440_s1 }
 0xeed   :  { %v1201_v23 = vpop.permute.xlu0 %1200 }
 0xeee   :  { %v1203_v24 = vadd.f32 %v1975_v60, %v1201_v23 }
 0xef0   :  { %2364 = vtanh.f32 %v1203_v24 }
 0xef1   :  { %v1305_v25 = vpop.permute.xlu1 %1304 }
 0xef2   :  { %v1307_v26 = vadd.f32 %v1978_v62, %v1305_v25 }
 0xef4   :  { %2366 = vtanh.f32 %v1307_v26  ;;  %v1987_v26 = vld [vmem:[%s2964_s0 + $0xe] sm:$0x3] }
 0xefd   :  { %v2365_v27 = vpop.eup %2364 }
 0xefe   :  { %1207 = vrot.lane.b32.xlu0 %v2365_v27, %s2441_s20 }
 0xf01   :  { %v2367_v28 = vpop.eup %2366 }
 0xf02   :  { %1311 = vrot.lane.b32.xlu1 %v2367_v28, %s2441_s20  ;;  %v1990_v28 = vld [vmem:[%s2964_s0 + $0x10] sm:$0x3] }
 0xf70   :  { %v1208_v30 = vpop.permute.xlu0 %1207 }
 0xf71   :  { %v1210_v32 = vmul.f32 %v1208_v30, %v1205_v29 }
 0xf73   :  { %v2835_v33 = vadd.f32 %v1211_v31, %v1210_v32 }
 0xf74   :  { %v1312_v35 = vpop.permute.xlu1 %1311 }
 0xf75   :  { %v1314_v37 = vmul.f32 %v1312_v35, %v1309_v34  ;;  %1318 = vrot.lane.b32.xlu0 %v2835_v33, %s2441_s20 }
 0xf77   :  { %v2840_v38 = vadd.f32 %v1315_v36, %v1314_v37 }
 0xf79   :  { %1322 = vst.msk [vmem:[#allocation2 + $0x4] sm:$0x3] %vm260_vm1, %v2840_v38  ;;  %1427 = vrot.lane.b32.xlu1 %v2840_v38, %s2441_s20 }
 0xfe7   :  { %v1319_v39 = vpop.permute.xlu0 %1318 }
 0xfe8   :  { %1321 = vst.msk [vmem:[#allocation2 + $0xa] sm:$0x3] %vm257_vm2, %v1319_v39  ;;  %2231 = vmatmul.mubr.msk.f32.vlgmr.msra.gmra.mxu0 %vm37_vm3, %v1319_v39 }
 0xfe9   :  { %2245 = vmatpush3.msra.mxu0 %v2484_v0  ;;  %2252 = vmatprep.mubr.msk.f32.mxu0 %vm2439_vm0, %v2438_v2 }
 0xfea   :  { %2246 = vmatprep.subr.mxu0 %v2438_v2 }
 0xfeb   :  { %v1428_v40 = vpop.permute.xlu1 %1427  ;;  %2247 = vmatpush3.msra.mxu0 %v2496_v3 }
 0xfec   :  { %2242 = vmatmul.mubr.msk.f32.vlgmr.msra.gmra.mxu1 %vm37_vm3, %v1428_v40  ;;  %2248 = vmatprep.subr.mxu0 %v2438_v2 }
 0xfed   :  { %2249 = vmatpush3.msra.mxu0 %v2510_v5  ;;  %2256 = vmatpush3.msra.mxu1 %v2489_v1 }
 0xfee   :  { %2250 = vmatprep.subr.mxu0 %v2438_v2  ;;  %2257 = vmatprep.subr.mxu1 %v2438_v2 }
 0xfef   :  { %2251 = vmatpush3.msra.mxu0 %v2524_v7  ;;  %2258 = vmatpush3.msra.mxu1 %v2501_v4 }
 0xff0   :  { %2259 = vmatprep.subr.mxu1 %v2438_v2  ;;  %2263 = vmatprep.mubr.msk.f32.mxu1 %vm2439_vm0, %v2438_v2 }
 0xff1   :  { %2260 = vmatpush3.msra.mxu1 %v2517_v6  ;;  %2266 = vmatprep.subr.mxu0 %v2438_v2  ;;  %v1981_v6 = vld [vmem:[%s2964_s0 + $0xc] sm:$0x3] }
 0xff2   :  { %2261 = vmatprep.subr.mxu1 %v2438_v2 }
 0xff3   :  { %2262 = vmatpush3.msra.mxu1 %v2532_v8  ;;  %v1984_v8 = vld [vmem:[%s2964_s0 + $0x12] sm:$0x3] }
 0xff4   :  { %2277 = vmatprep.subr.mxu1 %v2438_v2 }
0x10a8   :  { %v1393_v0 = vpop.f32.mrf.mxu0 }
0x10a9   :  { %v1404_v1 = vadd.f32 %v1393_v0, %v2573_v11  ;;  %v1397_v41 = vadd.f32 %v1981_v6, %v1393_v0 }
0x10aa   :  { %v2232_v3 = vpop.f32.mrf.mxu0 }
0x10ab   :  { %1406 = vrot.lane.b32.xlu0 %v1404_v1, %s2440_s1  ;;  %v1983_v42 = vmul.f32 -1.442695, %v1397_v41  ;;  %v1746_v41 = vld [vmem:[%s2967_s3 + $0x8] sm:$0xff] }
0x10ac   :  { %v1497_v4 = vpop.f32.mrf.mxu1 }
0x10ad   :  { %v1508_v5 = vadd.f32 %v1497_v4, %v2575_v13  ;;  %v1501_v43 = vadd.f32 %v1984_v8, %v1497_v4  ;;  %2368 = vpow2.f32 %v1983_v42  ;;  %v1748_v4 = vld [vmem:[%s2967_s3 + $0x18] sm:$0xff]  ;;  %v1745_v42 = vld [vmem:[%s2967_s3] sm:$0xff] }
0x10ae   :  { %v2243_v7 = vpop.f32.mrf.mxu1 }
0x10af   :  { %1510 = vrot.lane.b32.xlu1 %v1508_v5, %s2440_s1  ;;  %v1986_v44 = vmul.f32 -1.442695, %v1501_v43  ;;  %v1747_v5 = vld [vmem:[%s2967_s3 + $0x10] sm:$0xff]  ;;  %v1996_v7 = vld [vmem:[%s2967_s3 + $0x38] sm:$0xff] }
0x10b1   :  { %2370 = vpow2.f32 %v1986_v44  ;;  %v1994_v44 = vld [vmem:[%s2967_s3 + $0x28] sm:$0xff] }
0x10ba   :  { %v2369_v45 = vpop.eup %2368 }
0x10bb   :  { %v1401_v46 = vadd.f32 1.0, %v2369_v45  ;;  %v1993_v45 = vld [vmem:[%s2967_s3 + $0x20] sm:$0xff] }
0x10bd   :  { %2372 = vrcp.f32 %v1401_v46 }
0x10be   :  { %v2371_v47 = vpop.eup %2370 }
0x10bf   :  { %v1505_v48 = vadd.f32 1.0, %v2371_v47 }
0x10c1   :  { %2374 = vrcp.f32 %v1505_v48 }
0x10ca   :  { %v2373_v49 = vpop.eup %2372 }
0x10cb   :  { %v1416_v61 = vsub.f32 1.0, %v2373_v49  ;;  %v1422_v63 = vmul.f32 %v2373_v49, %v2835_v33 }
0x10ce   :  { %v2375_v52 = vpop.eup %2374 }
0x10cf   :  { %v1520_v12 = vsub.f32 1.0, %v2375_v52  ;;  %v1526_v15 = vmul.f32 %v2375_v52, %v2840_v38 }
0x111d   :  { %v1407_v50 = vpop.permute.xlu0 %1406 }
0x111e   :  { %v1409_v51 = vmul.f32 %v2373_v49, %v1407_v50 }
0x1120   :  { %1411 = vrot.lane.b32.xlu0 %v1409_v51, %s2440_s1 }
0x1121   :  { %v1511_v53 = vpop.permute.xlu1 %1510 }
0x1122   :  { %v1513_v54 = vmul.f32 %v2375_v52, %v1511_v53 }
0x1124   :  { %1515 = vrot.lane.b32.xlu1 %v1513_v54, %s2440_s1 }
0x1192   :  { %v1412_v55 = vpop.permute.xlu0 %1411 }
0x1193   :  { %v1414_v56 = vadd.f32 %v1981_v6, %v1412_v55  ;;  %v1995_v6 = vld [vmem:[%s2967_s3 + $0x30] sm:$0xff]  ;;  %s2442_s3 = smov [#allocation2]  }
0x1194   :  { %s1916_s15 = sshll.u32 %s2442_s3, 4  ;;  %s1917_s15 = int_to_ptr.vmem [resolvable:$true] %s1916_s15 }
0x1195   :  { %2376 = vtanh.f32 %v1414_v56  ;;  %s2394_s16 = scalar_lea.vmem %s1917_s15, 256  ;;  %p2399_p1 = scmp.lt.s32.totalorder %s1917_s15, %s1917_s15 }
0x1196   :  { %v1516_v57 = vpop.permute.xlu1 %1515  ;;  %p2395_p0 = scmp.ne.s32.totalorder %s1917_s15, %s2394_s16  ;;  %p2400_p2 = scmp.lt.s32.totalorder %s2394_s16, %s2394_s16 }
0x1197   :  { %v1518_v58 = vadd.f32 %v1984_v8, %v1516_v57 }
0x1198   :  { %p2401_p3 = por %p2400_p2, %p2399_p1 }
0x1199   :  { %2378 = vtanh.f32 %v1518_v58 }
0x119a   :  { %p2402_p4 = pnand %p2401_p3, %p2395_p0 }
0x11a2   :  { %v2377_v59 = vpop.eup %2376 }
0x11a3   :  { %1418 = vrot.lane.b32.xlu0 %v2377_v59, %s2441_s20 }
0x11a6   :  { %v2379_v60 = vpop.eup %2378 }
0x11a7   :  { %1522 = vrot.lane.b32.xlu1 %v2379_v60, %s2441_s20 }
0x1215   :  { %v1419_v62 = vpop.permute.xlu0 %1418 }
0x1216   :  { %v1421_v9 = vmul.f32 %v1419_v62, %v1416_v61 }
0x1218   :  { %v2884_v10 = vadd.f32 %v1422_v63, %v1421_v9 }
0x1219   :  { %v1523_v14 = vpop.permute.xlu1 %1522 }
0x121a   :  { %v1525_v16 = vmul.f32 %v1523_v14, %v1520_v12  ;;  %1529 = vrot.lane.b32.xlu0 %v2884_v10, %s2441_s20 }
0x121c   :  { %v2889_v17 = vadd.f32 %v1526_v15, %v1525_v16 }
0x121e   :  { %1533 = vst.msk [vmem:[#allocation2 + $0x2] sm:$0x3] %vm260_vm1, %v2889_v17  ;;  %1638 = vrot.lane.b32.xlu1 %v2889_v17, %s2441_s20 }
0x128c   :  { %v1530_v18 = vpop.permute.xlu0 %1529 }
0x128d   :  { %1532 = vst.msk [vmem:[#allocation2 + $0xc] sm:$0x3] %vm257_vm2, %v1530_v18  ;;  %2253 = vmatmul.mubr.msk.f32.vlgmr.msra.gmra.mxu0 %vm37_vm3, %v1530_v18 }
0x128e   :  { %2274 = vmatprep.mubr.msk.f32.mxu0 %vm2439_vm0, %v2438_v2  ;;  %2267 = vmatpush3.msra.mxu0 %v1996_v7 }
0x128f   :  { %2268 = vmatprep.subr.mxu0 %v2438_v2 }
0x1290   :  { %v1639_v19 = vpop.permute.xlu1 %1638  ;;  %2269 = vmatpush3.msra.mxu0 %v1995_v6 }
0x1291   :  { %2264 = vmatmul.mubr.msk.f32.vlgmr.msra.gmra.mxu1 %vm37_vm3, %v1639_v19  ;;  %2270 = vmatprep.subr.mxu0 %v2438_v2 }
0x1292   :  { %2285 = vmatprep.mubr.msk.f32.mxu1 %vm2439_vm0, %v2438_v2  ;;  %2278 = vmatpush3.msra.mxu1 %v1748_v4 }
0x1293   :  { %2279 = vmatprep.subr.mxu1 %v2438_v2  ;;  %2271 = vmatpush3.msra.mxu0 %v1994_v44 }
0x1294   :  { %2280 = vmatpush3.msra.mxu1 %v1747_v5  ;;  %2272 = vmatprep.subr.mxu0 %v2438_v2 }
0x1295   :  { %2281 = vmatprep.subr.mxu1 %v2438_v2  ;;  %2273 = vmatpush3.msra.mxu0 %v1993_v45 }
0x1296   :  { %2282 = vmatpush3.msra.mxu1 %v1746_v41 }
0x1297   :  { %2283 = vmatprep.subr.mxu1 %v2438_v2 }
0x1298   :  { %2284 = vmatpush3.msra.mxu1 %v1745_v42 }
0x134d   :  { %v1604_v20 = vpop.f32.mrf.mxu0 }
0x134e   :  { %v1615_v21 = vadd.f32 %v1604_v20, %v2573_v11  ;;  %v1608_v27 = vadd.f32 %v1987_v26, %v1604_v20 }
0x134f   :  { %v2254_v22 = vpop.f32.mrf.mxu0 }
0x1350   :  { %1617 = vrot.lane.b32.xlu0 %v1615_v21, %s2440_s1  ;;  %v1989_v29 = vmul.f32 -1.442695, %v1608_v27 }
0x1351   :  { %v1708_v23 = vpop.f32.mrf.mxu1 }
0x1352   :  { %v1719_v24 = vadd.f32 %v1708_v23, %v2575_v13  ;;  %v1712_v11 = vadd.f32 %v1990_v28, %v1708_v23  ;;  %2380 = vpow2.f32 %v1989_v29 }
0x1353   :  { %v2265_v25 = vpop.f32.mrf.mxu1 }
0x1354   :  { %1721 = vrot.lane.b32.xlu1 %v1719_v24, %s2440_s1  ;;  %v1992_v30 = vmul.f32 -1.442695, %v1712_v11 }
0x1356   :  { %2382 = vpow2.f32 %v1992_v30 }
0x135f   :  { %v2381_v31 = vpop.eup %2380 }
0x1360   :  { %v1612_v32 = vadd.f32 1.0, %v2381_v31 }
0x1362   :  { %2384 = vrcp.f32 %v1612_v32 }
0x1363   :  { %v2383_v13 = vpop.eup %2382 }
0x1364   :  { %v1716_v33 = vadd.f32 1.0, %v2383_v13 }
0x1366   :  { %2386 = vrcp.f32 %v1716_v33 }
0x136f   :  { %v2385_v34 = vpop.eup %2384 }
0x1370   :  { %v1627_v46 = vsub.f32 1.0, %v2385_v34  ;;  %v1633_v48 = vmul.f32 %v2385_v34, %v2884_v10 }
0x1373   :  { %v2387_v37 = vpop.eup %2386 }
0x1374   :  { %v1731_v51 = vsub.f32 1.0, %v2387_v37  ;;  %v1737_v53 = vmul.f32 %v2387_v37, %v2889_v17 }
0x13c2   :  { %v1618_v35 = vpop.permute.xlu0 %1617 }
0x13c3   :  { %v1620_v36 = vmul.f32 %v2385_v34, %v1618_v35 }
0x13c5   :  { %1622 = vrot.lane.b32.xlu0 %v1620_v36, %s2440_s1 }
0x13c6   :  { %v1722_v38 = vpop.permute.xlu1 %1721 }
0x13c7   :  { %v1724_v39 = vmul.f32 %v2387_v37, %v1722_v38 }
0x13c9   :  { %1726 = vrot.lane.b32.xlu1 %v1724_v39, %s2440_s1 }
0x1437   :  { %v1623_v40 = vpop.permute.xlu0 %1622 }
0x1438   :  { %v1625_v0 = vadd.f32 %v1987_v26, %v1623_v40 }
0x143a   :  { %2388 = vtanh.f32 %v1625_v0 }
0x143b   :  { %v1727_v1 = vpop.permute.xlu1 %1726 }
0x143c   :  { %v1729_v3 = vadd.f32 %v1990_v28, %v1727_v1 }
0x143e   :  { %2390 = vtanh.f32 %v1729_v3 }
0x1447   :  { %v2389_v8 = vpop.eup %2388 }
0x1448   :  { %1629 = vrot.lane.b32.xlu0 %v2389_v8, %s2441_s20 }
0x144b   :  { %v2391_v43 = vpop.eup %2390 }
0x144c   :  { %1733 = vrot.lane.b32.xlu1 %v2391_v43, %s2441_s20 }
0x14ba   :  { %v1630_v47 = vpop.permute.xlu0 %1629 }
0x14bb   :  { %v1632_v49 = vmul.f32 %v1630_v47, %v1627_v46 }
0x14bd   :  { %v1634_v50 = vadd.f32 %v1633_v48, %v1632_v49 }
0x14be   :  { %v1734_v52 = vpop.permute.xlu1 %1733 }
0x14bf   :  { %v1736_v54 = vmul.f32 %v1734_v52, %v1731_v51  ;;  %1740 = vrot.lane.b32.xlu0 %v1634_v50, %s2441_s20 }
0x14c1   :  { %v1738_v55 = vadd.f32 %v1737_v53, %v1736_v54 }
0x14c3   :  { %1744 = vst.msk [vmem:[#allocation2] sm:$0x3] %vm260_vm1, %v1738_v55  ;;  %1755 = vrot.lane.b32.xlu1 %v1738_v55, %s2441_s20 }
0x1531   :  { %v1741_v2 = vpop.permute.xlu0 %1740 }
0x1532   :  { %1743 = vst.msk [vmem:[#allocation2 + $0xe] sm:$0x3] %vm257_vm2, %v1741_v2  ;;  %2286 = vmatmul.mubr.msk.f32.vlgmr.msra.gmra.mxu1 %vm37_vm3, %v1741_v2 }
0x1535   :  { %v1756_v56 = vpop.permute.xlu1 %1755 }
0x1536   :  { %2275 = vmatmul.mubr.msk.f32.vlgmr.msra.gmra.mxu0 %vm37_vm3, %v1756_v56 }
0x1537   :  { %2405 = shalt.err (!%p2402_p4)
}
0x1538   :  { %s2443_s2 = smov 32   ;;  %s2444_s20 = smov 2   ;;  %v1999_v60 = vld [vmem:[%s2968_s4] ss:$0 sm:$0xff] }
0x1539   :  { %1922 = dma.vmem_to_hbm [thread:$0]  %s1917_s15, 256, %s2969_s5, [#allocation3], %s2443_s2, %s2443_s2, %s2444_s20  }
0x153a   :  { %s2445_s22 = smov [#allocation4]  }
0x153b   :  { %s1929_s23 = sshll.u32 %s2445_s22, 4  ;;  %s1930_s23 = int_to_ptr.vmem [resolvable:$true] %s1929_s23 }
0x153c   :  { %s2414_s24 = scalar_lea.vmem %s1930_s23, 32  ;;  %p2419_p6 = scmp.lt.s32.totalorder %s1930_s23, %s1930_s23 }
0x153d   :  { %p2415_p5 = scmp.ne.s32.totalorder %s1930_s23, %s2414_s24  ;;  %p2420_p7 = scmp.lt.s32.totalorder %s2414_s24, %s2414_s24 }
0x153f   :  { %p2421_p8 = por %p2420_p7, %p2419_p6 }
0x1541   :  { %p2422_p9 = pnand %p2421_p8, %p2415_p5 }
0x15f2   :  { %v1897_v57 = vpop.f32.mrf.mxu1 }
0x15f4   :  { %v2287_v58 = vpop.f32.mrf.mxu1 }
0x15f6   :  { %v1825_v59 = vpop.f32.mrf.mxu0 }
0x15f7   :  { %v1898_v61 = vadd.f32 %v1897_v57, %v1825_v59 }
0x15f8   :  { %v2276_v62 = vpop.f32.mrf.mxu0 }
0x15f9   :  { %v1908_v63 = vadd.f32 %v1999_v60, %v1898_v61 }
0x15fb   :  { %2392 = vtanh.f32 %v1908_v63 }
0x1608   :  { %v2393_v9 = vpop.eup %2392 }
0x1609   :  { %1910 = vst.msk [vmem:[#allocation4] sm:$0x3] %vm257_vm2, %v2393_v9 }
0x160a   :  { %2425 = shalt.err (!%p2422_p9)
}
0x160b   :  { %1932 = dma.vmem_to_hbm [thread:$0]  %s1930_s23, 32, %s2970_s6, [#allocation5]  }
0x160c   :  { %2434 = dma.done.wait [#allocation3], 256  }
0x160d   :  { %2435 = vsyncadd [#allocation3], 4294967040 }
0x160e   :  { %2436 = dma.done.wait [#allocation5], 32  }
0x160f   :  { %2437 = vsyncadd [#allocation5], 4294967264 }
0x1610   :  { %1939 = vsyncpa [#allocation3], 1 }
0x1611   :  { %1940 = vsyncpa [#allocation5], 1 }

</bundles_post_ra>
